<compile_context>
chip_gen: v7x
topology: tpu7x:2x2x1
jax: 0.10.0
libtpu: 0.0.40
codegen_flags: <defaults>
</compile_context>

<pallas_src>
import functools

import jax
import jax.numpy as jnp
from jax.experimental import pallas as pl
from jax.experimental.pallas import tpu as pltpu


# ----------------------------- kernel -----------------------------

def _conv_kernel(x_ref, w_ref, b_ref, o_ref, *, k, stride, toh, ow, cin):
    """Fused reflection-padded KxK conv (+bias) on one output tile.

    x_ref: (1, Hp, Wp, Cin)   whole reflection-padded image, bf16 (VMEM resident)
    w_ref: (K*K*Cin, TCO)     tap-major fused weight matrix, bf16
    b_ref: (1, TCO)           bias, f32
    o_ref: (1, TOH*OW, TCO)   output tile, f32
    """
    i = pl.program_id(2)                                   # output-row tile index
    row0 = pl.multiple_of(i * (toh * stride), toh * stride)

    # Build the K*K shifted tap views from the padded tile (VMEM, no HBM im2col).
    taps = []
    for kh in range(k):
        for kw in range(k):
            if stride == 1:
                t = x_ref[0, pl.ds(row0 + kh, toh), kw:kw + ow, :]
            else:
                # strided window loads for downsampling layers
                t = x_ref[0,
                          pl.ds(row0 + kh, toh, stride),
                          pl.ds(kw, ow, stride), :]
            taps.append(t)                                  # (TOH, OW, Cin)

    patches = jnp.concatenate(taps, axis=-1)                # (TOH, OW, K*K*Cin)
    patches = patches.reshape(toh * ow, k * k * cin)        # (TOH*OW, K*K*Cin)

    # Single MXU contraction, bf16 inputs, f32 accumulation.
    acc = jnp.dot(patches, w_ref[...], preferred_element_type=jnp.float32)
    acc = acc + b_ref[...]                                  # bias broadcast over rows
    o_ref[0] = acc.astype(o_ref.dtype)


# ----------------------------- wrapper -----------------------------

def _vmem_limit_bytes():
    # ~3/8 of physical VMEM: ~48 MiB on v5e/v6e (128 MiB), ~24 MiB on v7x (64 MiB).
    default = 128 * 1024 * 1024
    try:
        phys = getattr(pltpu.get_tpu_info(), "vmem_capacity_bytes", default)
    except Exception:
        phys = default
    return int(phys * 3 // 8)


def _pick_toh(oh, ow, target_rows=512):
    """Largest divisor of OH giving ~target_rows output rows with (TOH*OW)%8==0."""
    target = max(1, target_rows // max(ow, 1))
    for t in range(min(target, oh), 0, -1):
        if oh % t == 0 and (t * ow) % 8 == 0:
            return t
    return oh


def conv_layer(x_nchw, weight, bias, kernel_size, stride):
    """PyTorch ConvLayer forward: ReflectionPad2d(k//2) + Conv2d(k, stride).

    x_nchw: (N, Cin, H, W) f32
    weight: (Cout, Cin, K, K) f32  (nn.Conv2d layout)
    bias:   (Cout,) f32
    Returns (N, Cout, OH, OW) f32.
    """
    n, cin, h, w = x_nchw.shape
    cout = weight.shape[0]
    k = kernel_size
    pad = k // 2
    oh = (h + 2 * pad - k) // stride + 1
    ow = (w + 2 * pad - k) // stride + 1

    # NCHW -> NHWC (channels on the 128-lane axis), reflection pad, cast to bf16.
    x = jnp.transpose(x_nchw, (0, 2, 3, 1)).astype(jnp.float32)
    xp = jnp.pad(x, ((0, 0), (pad, pad), (pad, pad), (0, 0)), mode="reflect")
    xp = xp.astype(jnp.bfloat16)
    hp, wp = h + 2 * pad, w + 2 * pad

    # (Cout, Cin, K, K) -> (K*K*Cin, Cout), tap-major (kh, kw, ci) to match the
    # in-kernel patch ordering; stored as bf16 MXU weights.
    w_mat = jnp.transpose(weight, (2, 3, 1, 0)).reshape(k * k * cin, cout)
    w_mat = w_mat.astype(jnp.bfloat16)
    b_mat = bias.reshape(1, cout).astype(jnp.float32)

    # Tile Cout (lane axis) and output rows so the f32 accumulator stays bounded.
    tco = cout if (cout <= 128 or cout % 128 != 0) else 128
    toh = _pick_toh(oh, ow)
    grid = (n, cout // tco, oh // toh)

    kern = functools.partial(_conv_kernel, k=k, stride=stride,
                             toh=toh, ow=ow, cin=cin)

    out = pl.pallas_call(
        kern,
        out_shape=jax.ShapeDtypeStruct((n, oh * ow, cout), jnp.float32),
        grid_spec=pltpu.PrefetchScalarGridSpec(
            num_scalar_prefetch=0,
            grid=grid,
            in_specs=[
                # Whole padded image, indexed by batch only -> DMA'd once per image.
                pl.BlockSpec((1, hp, wp, cin), lambda b, co, i: (b, 0, 0, 0)),
                # Weights indexed by Cout tile only -> resident across the row loop.
                pl.BlockSpec((k * k * cin, tco), lambda b, co, i: (0, co)),
                pl.BlockSpec((1, tco), lambda b, co, i: (0, co)),
            ],
            out_specs=pl.BlockSpec((1, toh * ow, tco), lambda b, co, i: (b, i, co)),
        ),
        compiler_params=pltpu.CompilerParams(
            dimension_semantics=("parallel", "parallel", "parallel"),
            vmem_limit_bytes=_vmem_limit_bytes()),
    )(xp, w_mat, b_mat)

    out = out.reshape(n, oh, ow, cout)
    return jnp.transpose(out, (0, 3, 1, 2))    # back to NCHW


# ----------------------------- reference -----------------------------

def _conv_layer_ref(x_nchw, weight, bias, kernel_size, stride):
    pad = kernel_size // 2
    xp = jnp.pad(x_nchw, ((0, 0), (0, 0), (pad, pad), (pad, pad)), mode="reflect")
    y = jax.lax.conv_general_dilated(
        xp, weight, window_strides=(stride, stride), padding="VALID",
        dimension_numbers=("NCHW", "OIHW", "NCHW"),
        precision=jax.lax.Precision.HIGHEST)
    return y + bias.reshape(1, -1, 1, 1)


# ----------------------------- demo / check -----------------------------

if __name__ == "__main__":
    key = jax.random.PRNGKey(0)
    kx, kw, kb = jax.random.split(key, 3)

    N, CIN, H, W = 2, 4, 16, 16
    COUT, K, STRIDE = 8, 3, 1

    x = jax.random.normal(kx, (N, CIN, H, W), jnp.float32)
    fan_in = CIN * K * K
    weight = (2.0 / fan_in) ** 0.5 * jax.random.normal(
        kw, (COUT, CIN, K, K), jnp.float32)
    bias = 0.1 * jax.random.normal(kb, (COUT,), jnp.float32)

    fwd = jax.jit(functools.partial(conv_layer, kernel_size=K, stride=STRIDE))
    y = jax.block_until_ready(fwd(x, weight, bias))

    # Pure-JAX reference on the same bf16-rounded operands (kernel uses bf16 MXU
    # inputs with f32 accumulation).
    xr = x.astype(jnp.bfloat16).astype(jnp.float32)
    wr = weight.astype(jnp.bfloat16).astype(jnp.float32)
    y_ref = _conv_layer_ref(xr, wr, bias, K, STRIDE)

    OH = (H + 2 * (K // 2) - K) // STRIDE + 1
    OW = (W + 2 * (K // 2) - K) // STRIDE + 1
    assert y.shape == (N, COUT, OH, OW), y.shape
    assert bool(jnp.all(jnp.isfinite(y)))
    err = float(jnp.max(jnp.abs(y - y_ref)))
    scale = float(jnp.max(jnp.abs(y_ref))) + 1e-6
    assert err / scale < 1e-3, (err, scale)

    print("KERNEL_OK")
</pallas_src>

<mosaic_0001>
module attributes {stable_mosaic.version = 11 : i64} {
  func.func @_conv_kernel(%arg0: i32, %arg1: i32, %arg2: i32, %arg3: memref<1x18x18x4xbf16, #tpu.memory_space<vmem>>, %arg4: memref<36x8xbf16, #tpu.memory_space<vmem>>, %arg5: memref<1x8xf32, #tpu.memory_space<vmem>>, %arg6: memref<1x256x8xf32, #tpu.memory_space<vmem>>) attributes {dimension_semantics = [#tpu.dimension_semantics<parallel>, #tpu.dimension_semantics<parallel>, #tpu.dimension_semantics<parallel>], iteration_bounds = array<i64: 2, 1, 1>, scalar_prefetch = 0 : i64, scratch_operands = 0 : i64, tpu.core_type = #tpu.core_type<tc>, window_params = [{transform_indices = @transform_0, window_bounds = array<i64: 1, 18, 18, 4>}, {transform_indices = @transform_1, window_bounds = array<i64: 36, 8>}, {transform_indices = @transform_2, window_bounds = array<i64: 1, 8>}, {transform_indices = @transform_3, window_bounds = array<i64: 1, 256, 8>}]} {
    %c16_i32 = arith.constant 16 : i32
    %0 = arith.muli %arg2, %c16_i32 : i32
    %1 = tpu.assume_multiple %0, 16 : i32
    %c0_i32 = arith.constant 0 : i32
    %2 = arith.addi %1, %c0_i32 : i32
    %c0 = arith.constant 0 : index
    %3 = arith.index_cast %2 : i32 to index
    %c0_0 = arith.constant 0 : index
    %c0_1 = arith.constant 0 : index
    %4 = vector.load %arg3[%c0, %3, %c0_0, %c0_1] : memref<1x18x18x4xbf16, #tpu.memory_space<vmem>>, vector<1x16x16x4xbf16>
    %5 = vector.shape_cast %4 : vector<1x16x16x4xbf16> to vector<16x16x4xbf16>
    %c0_i32_2 = arith.constant 0 : i32
    %6 = arith.addi %1, %c0_i32_2 : i32
    %c0_3 = arith.constant 0 : index
    %7 = arith.index_cast %6 : i32 to index
    %c1 = arith.constant 1 : index
    %c0_4 = arith.constant 0 : index
    %8 = vector.load %arg3[%c0_3, %7, %c1, %c0_4] : memref<1x18x18x4xbf16, #tpu.memory_space<vmem>>, vector<1x16x16x4xbf16>
    %9 = vector.shape_cast %8 : vector<1x16x16x4xbf16> to vector<16x16x4xbf16>
    %c0_i32_5 = arith.constant 0 : i32
    %10 = arith.addi %1, %c0_i32_5 : i32
    %c0_6 = arith.constant 0 : index
    %11 = arith.index_cast %10 : i32 to index
    %c2 = arith.constant 2 : index
    %c0_7 = arith.constant 0 : index
    %12 = vector.load %arg3[%c0_6, %11, %c2, %c0_7] : memref<1x18x18x4xbf16, #tpu.memory_space<vmem>>, vector<1x16x16x4xbf16>
    %13 = vector.shape_cast %12 : vector<1x16x16x4xbf16> to vector<16x16x4xbf16>
    %c1_i32 = arith.constant 1 : i32
    %14 = arith.addi %1, %c1_i32 : i32
    %c0_8 = arith.constant 0 : index
    %15 = arith.index_cast %14 : i32 to index
    %c0_9 = arith.constant 0 : index
    %c0_10 = arith.constant 0 : index
    %16 = vector.load %arg3[%c0_8, %15, %c0_9, %c0_10] : memref<1x18x18x4xbf16, #tpu.memory_space<vmem>>, vector<1x16x16x4xbf16>
    %17 = vector.shape_cast %16 : vector<1x16x16x4xbf16> to vector<16x16x4xbf16>
    %c1_i32_11 = arith.constant 1 : i32
    %18 = arith.addi %1, %c1_i32_11 : i32
    %c0_12 = arith.constant 0 : index
    %19 = arith.index_cast %18 : i32 to index
    %c1_13 = arith.constant 1 : index
    %c0_14 = arith.constant 0 : index
    %20 = vector.load %arg3[%c0_12, %19, %c1_13, %c0_14] : memref<1x18x18x4xbf16, #tpu.memory_space<vmem>>, vector<1x16x16x4xbf16>
    %21 = vector.shape_cast %20 : vector<1x16x16x4xbf16> to vector<16x16x4xbf16>
    %c1_i32_15 = arith.constant 1 : i32
    %22 = arith.addi %1, %c1_i32_15 : i32
    %c0_16 = arith.constant 0 : index
    %23 = arith.index_cast %22 : i32 to index
    %c2_17 = arith.constant 2 : index
    %c0_18 = arith.constant 0 : index
    %24 = vector.load %arg3[%c0_16, %23, %c2_17, %c0_18] : memref<1x18x18x4xbf16, #tpu.memory_space<vmem>>, vector<1x16x16x4xbf16>
    %25 = vector.shape_cast %24 : vector<1x16x16x4xbf16> to vector<16x16x4xbf16>
    %c2_i32 = arith.constant 2 : i32
    %26 = arith.addi %1, %c2_i32 : i32
    %c0_19 = arith.constant 0 : index
    %27 = arith.index_cast %26 : i32 to index
    %c0_20 = arith.constant 0 : index
    %c0_21 = arith.constant 0 : index
    %28 = vector.load %arg3[%c0_19, %27, %c0_20, %c0_21] : memref<1x18x18x4xbf16, #tpu.memory_space<vmem>>, vector<1x16x16x4xbf16>
    %29 = vector.shape_cast %28 : vector<1x16x16x4xbf16> to vector<16x16x4xbf16>
    %c2_i32_22 = arith.constant 2 : i32
    %30 = arith.addi %1, %c2_i32_22 : i32
    %c0_23 = arith.constant 0 : index
    %31 = arith.index_cast %30 : i32 to index
    %c1_24 = arith.constant 1 : index
    %c0_25 = arith.constant 0 : index
    %32 = vector.load %arg3[%c0_23, %31, %c1_24, %c0_25] : memref<1x18x18x4xbf16, #tpu.memory_space<vmem>>, vector<1x16x16x4xbf16>
    %33 = vector.shape_cast %32 : vector<1x16x16x4xbf16> to vector<16x16x4xbf16>
    %c2_i32_26 = arith.constant 2 : i32
    %34 = arith.addi %1, %c2_i32_26 : i32
    %c0_27 = arith.constant 0 : index
    %35 = arith.index_cast %34 : i32 to index
    %c2_28 = arith.constant 2 : index
    %c0_29 = arith.constant 0 : index
    %36 = vector.load %arg3[%c0_27, %35, %c2_28, %c0_29] : memref<1x18x18x4xbf16, #tpu.memory_space<vmem>>, vector<1x16x16x4xbf16>
    %37 = vector.shape_cast %36 : vector<1x16x16x4xbf16> to vector<16x16x4xbf16>
    %38 = tpu.concatenate %5, %9, %13, %17, %21, %25, %29, %33, %37 in 2 : vector<16x16x4xbf16>, vector<16x16x4xbf16>, vector<16x16x4xbf16>, vector<16x16x4xbf16>, vector<16x16x4xbf16>, vector<16x16x4xbf16>, vector<16x16x4xbf16>, vector<16x16x4xbf16>, vector<16x16x4xbf16> -> vector<16x16x36xbf16>
    %39 = vector.shape_cast %38 : vector<16x16x36xbf16> to vector<256x36xbf16>
    %c0_30 = arith.constant 0 : index
    %c0_31 = arith.constant 0 : index
    %40 = vector.load %arg4[%c0_30, %c0_31] : memref<36x8xbf16, #tpu.memory_space<vmem>>, vector<36x8xbf16>
    %cst = arith.constant dense<0.000000e+00> : vector<256x8xf32>
    %41 = tpu.matmul %39, %40, %cst {dimension_numbers = #tpu.dot_dimension_numbers<[1], [0], [0], [1], [0, 0, 1, 1], [], []>} : vector<256x36xbf16>, vector<36x8xbf16>, vector<256x8xf32> -> vector<256x8xf32>
    %c0_32 = arith.constant 0 : index
    %c0_33 = arith.constant 0 : index
    %42 = vector.load %arg5[%c0_32, %c0_33] : memref<1x8xf32, #tpu.memory_space<vmem>>, vector<1x8xf32>
    %43 = vector.broadcast %42 : vector<1x8xf32> to vector<256x8xf32>
    %44 = arith.addf %41, %43 : vector<256x8xf32>
    %c0_34 = arith.constant 0 : index
    %c0_35 = arith.constant 0 : index
    %c0_36 = arith.constant 0 : index
    %45 = vector.load %arg6[%c0_34, %c0_35, %c0_36] : memref<1x256x8xf32, #tpu.memory_space<vmem>>, vector<1x256x8xf32>
    %46 = vector.shape_cast %45 : vector<1x256x8xf32> to vector<256x8xf32>
    %47 = vector.shape_cast %44 : vector<256x8xf32> to vector<1x256x8xf32>
    tpu.vector_store %arg6[%c0_34, %c0_35, %c0_36], %47 {strides = array<i32>} : memref<1x256x8xf32, #tpu.memory_space<vmem>>, vector<1x256x8xf32>,
    return
  }
  func.func @transform_0(%arg0: i32, %arg1: i32, %arg2: i32) -> (i32, i32, i32, i32) {
    %c0_i32 = arith.constant 0 : i32
    %c0_i32_0 = arith.constant 0 : i32
    %c0_i32_1 = arith.constant 0 : i32
    %c0_i32_2 = arith.constant 0 : i32
    return %arg0, %c0_i32, %c0_i32_0, %c0_i32_1 : i32, i32, i32, i32
  }
  func.func @transform_1(%arg0: i32, %arg1: i32, %arg2: i32) -> (i32, i32) {
    %c0_i32 = arith.constant 0 : i32
    %c0_i32_0 = arith.constant 0 : i32
    return %c0_i32, %arg1 : i32, i32
  }
  func.func @transform_2(%arg0: i32, %arg1: i32, %arg2: i32) -> (i32, i32) {
    %c0_i32 = arith.constant 0 : i32
    %c0_i32_0 = arith.constant 0 : i32
    return %c0_i32, %arg1 : i32, i32
  }
  func.func @transform_3(%arg0: i32, %arg1: i32, %arg2: i32) -> (i32, i32, i32) {
    %c0_i32 = arith.constant 0 : i32
    return %arg0, %arg2, %arg1 : i32, i32, i32
  }
}

</mosaic_0001>

<bundles_post_ra>
// kernel: conv_layer.1
= control target key start
LH: loop header
LB: loop body
LE: loop exit
PB: predicated region body
PF: predicated region fallthrough
CT: control target
= control target key end

     0   :  { %s3205_s12 = smov 0   ;;  %s3207_s13 = smov 0   ;;  %s4554_s0 = inlined_call_operand.vmem [shape: bf16[2,18,18,4], index: 0, kind: input, shape index: {}]   ;;  %s4555_s1 = inlined_call_operand.vmem [shape: bf16[36,8], index: 1, kind: input, shape index: {}]   ;;  %s4556_s2 = inlined_call_operand.vmem [shape: f32[1,8], index: 2, kind: input, shape index: {}]   ;;  %s4557_s3 = inlined_call_operand.vmem [shape: f32[2,256,8], index: 3, kind: output, shape index: {}]  }
   0x1   :  { %s3209_s14 = smov 0  }
   0x2 LB: > { %s32_s15 = sadd.s32 1, %s3171_s13  ;;  %p2609_p0 = scmp.ge.s32.totalorder %s3175_s14, 1  ;;  %s3175_s14 = sphi %s3209_s14, %s13_s14   ;;  %s3171_s13 = sphi %s3207_s13, %s4571_s13   ;;  %s3167_s12 = sphi %s3205_s12, %s4570_s12  }
   0x3   : > { %p34_p1 = scmp.ge.s32.totalorder %s32_s15, 2  ;;  %p177_p2 = scmp.lt.s32.totalorder %s3175_s14, 3 }
   0x5   : > { %s4573_s15 = smov (%p34_p1, %s32_s15), 0  ;;  %p178_p3 = pnand %p2609_p0, %p177_p2 }
   0x7   : > { %181 = sbr.rel (%p178_p3) target bundleno = 612 (0x264), region = 32 }
   0xe   : > { %p215_p4 = scmp.lt.s32.totalorder %s3167_s12, 1  ;;  %s3177_s20 = smov 12   ;;  %vm846_vm0 = vcmask 1046528   ;;  %vm573_vm1 = vsmask.f32 7424  ;;  %vm2275_vm2 = vcmask 1041408  }
   0xf   : > { %s3178_s21 = smov 8   ;;  %s3179_s22 = smov 4   ;;  %vm1951_vm3 = vcmask 31744   ;;  %vm1984_vm4 = vcmask 64512   ;;  %vm2017_vm5 = vcmask 97280   ;;  %vm2050_vm6 = vcmask 130048  }
  0x10   : > { %s4575_s12 = smov (!%p215_p4, %s3167_s12), 1  ;;  %s3180_s23 = smov 16   ;;  %vm2083_vm7 = vcmask 162816   ;;  %vm2116_vm8 = vcmask 195584   ;;  %vm2149_vm9 = vcmask 228352   ;;  %vm2182_vm10 = vcmask 261120  }
  0x11   : > { %s2973_s16 = smul.u32 216, %s4575_s12  ;;  %s3181_s24 = smov 20   ;;  %vm2242_vm11 = vcmask 293888  }
  0x12   : > { %s3182_s27 = smov 24   ;;  %s3183_s30 = smov 28  }
  0x13   : > { %s3229_s19 = scalar_lea.vmem %s4554_s0, %s2973_s16  ;;  %s3184_s4 = smov 32  }
  0x14   : > { %v2629_v0 = vld [vmem:[%s3229_s19 + $0x6c] sm:$0xf]  ;;  %v3233_v1 = vld [vmem:[%s3229_s19 + $0x70] sm:$0xf]  ;;  %v262_v6 = vld [vmem:[%s3229_s19 + $0x64] sm:$0xf] }
  0x15   : > { %v3236_v2 = vcombine.low %v2629_v0, %v3233_v1  ;;  %v2613_v3 = vld [vmem:[%s3229_s19 + $0xc] sm:$0xf]  ;;  %v3240_v4 = vld [vmem:[%s3229_s19 + $0x10] sm:$0xf]  ;;  %v301_v7 = vld [vmem:[%s3229_s19 + $0x60] sm:$0xe] }
  0x16   : > { %v3243_v5 = vcombine.low %v2613_v3, %v3240_v4  ;;  %v3250_v8 = vld [vmem:[%s3229_s19 + $0x68] ss:$0 sps:$4 sm:$0x11]   ;;  %v2781_v9 = vcombine.low %v301_v7, %v262_v6  ;;  %v261_v10 = vld [vmem:[%s3229_s19 + $0x60] sm:$0xf]  ;;  %s2907_s7 = sshll.u32 %s4575_s12, 8 }
  0x17   : > { %1023 = vrot.lane.b32.xlu1 %v3236_v2, %s3177_s20  ;;  %v1186_v11 = vshll.u32 %v3236_v2, 16  ;;  %v246_v12 = vld [vmem:[%s3229_s19 + $0x4] sm:$0xf]  ;;  %v872_v14 = vrot.slane %v3250_v8, 1  ;;  %v293_v15 = vld [vmem:[%s3229_s19] sm:$0xe]  ;;  %v3261_v18 = vcombine.low %v261_v10, %v262_v6  ;;  %s4447_s16 = scalar_lea.vmem %s4557_s3, %s2907_s7 }
  0x18   : > { %1007 = vrot.lane.b32.xlu0 %v3243_v5, %s3177_s20  ;;  %v871_v13 = vrot.slane %v2781_v9, 1  ;;  %v245_v16 = vld [vmem:[%s3229_s19] sm:$0xf]  ;;  %v1090_v17 = vshll.u32 %v3243_v5, 16  ;;  %v2773_v20 = vcombine.low %v293_v15, %v246_v12  ;;  %v263_v21 = vld [vmem:[%s3229_s19 + $0x6c] sm:$0xf] }
  0x19   : > { %v3013_v19 = vld [vmem:[%s3229_s19 + $0x8] ss:$0 sps:$4 sm:$0x11]   ;;  %v3266_v23 = vcombine.low %v245_v16, %v246_v12  ;;  %v264_v24 = vld [vmem:[%s3229_s19 + $0x70] sm:$0xf]  ;;  %v671_v30 = vshrl.u32 %v3261_v18, 16 }
  0x1a   : > { %v873_v22 = vsel %vm846_vm0, %v871_v13, %v872_v14  ;;  %v302_v25 = vld [vmem:[%s3229_s19 + $0x6c] sm:$0xe]  ;;  %v847_v26 = vrot.slane %v2773_v20, 1  ;;  %v848_v27 = vrot.slane %v3013_v19, 1  ;;  %v3273_v31 = vcombine.low %v263_v21, %v264_v24  ;;  %v248_v33 = vld [vmem:[%s3229_s19 + $0x10] sm:$0xf] }
  0x1b   : > { %911 = vrot.lane.b32.xlu1 %v873_v22, %s3178_s21  ;;  %v3017_v28 = vld [vmem:[%s3229_s19 + $0x74] ss:$0 sps:$4 sm:$0x11]   ;;  %v2782_v29 = vcombine.low %v302_v25, %v264_v24  ;;  %v247_v32 = vld [vmem:[%s3229_s19 + $0xc] sm:$0xf]  ;;  %v575_v41 = vshrl.u32 %v3266_v23, 16 }
  0x1c   : > { %v849_v34 = vsel %vm846_vm0, %v847_v26, %v848_v27  ;;  %v875_v36 = vrot.slane %v3017_v28, 1  ;;  %v294_v37 = vld [vmem:[%s3229_s19 + $0xc] sm:$0xe]  ;;  %v3279_v38 = vcombine.low %v247_v32, %v248_v33  ;;  %v3020_v39 = vld [vmem:[%s3229_s19 + $0x14] ss:$0 sps:$4 sm:$0x11]  }
  0x1d   : > { %v874_v35 = vrot.slane %v2782_v29, 1  ;;  %895 = vrot.lane.b32.xlu0 %v849_v34, %s3178_s21  ;;  %v2774_v40 = vcombine.low %v294_v37, %v248_v33  ;;  %v577_v42 = vshll.u32 %v3266_v23, 16  ;;  %v582_v43 = vshll.u32 %v3013_v19, 16  ;;  %v2631_v52 = vld [vmem:[%s3229_s19 + $0x78] sm:$0xf] }
  0x1e   : > { %v587_v45 = vshrl.u32 %v3279_v38, 16  ;;  %v589_v46 = vshll.u32 %v3279_v38, 16  ;;  %v683_v47 = vshrl.u32 %v3273_v31, 16  ;;  %v851_v49 = vrot.slane %v3020_v39, 1  ;;  %v3293_v57 = vld [vmem:[%s3229_s19 + $0x7c] sm:$0xf] }
  0x1f   : > { %v876_v44 = vsel %vm846_vm0, %v874_v35, %v875_v36  ;;  %v850_v48 = vrot.slane %v2774_v40, 1  ;;  %v594_v50 = vshll.u32 %v3020_v39, 16  ;;  %v579_v51 = vrot.slane %v577_v42, 1  ;;  %v2615_v62 = vld [vmem:[%s3229_s19 + $0x18] sm:$0xf] }
  0x20   : > { %913 = vrot.lane.b32.xlu1 %v876_v44, %s3178_s21  ;;  %v591_v53 = vrot.slane %v589_v46, 1  ;;  %v584_v54 = vrot.slane %v582_v43, 1  ;;  %v685_v55 = vshll.u32 %v3273_v31, 16  ;;  %v690_v56 = vshll.u32 %v3017_v28, 16  ;;  %v3299_v63 = vld [vmem:[%s3229_s19 + $0x1c] sm:$0xf] }
  0x21   : > { %v852_v58 = vsel %vm846_vm0, %v850_v48, %v851_v49  ;;  %v596_v59 = vrot.slane %v594_v50, 1  ;;  %v580_v60 = vor.u32 %v579_v51, %v575_v41  ;;  %v673_v61 = vshll.u32 %v3261_v18, 16  ;;  %v3306_v13 = vld [vmem:[%s3229_s19 + $0x74] ss:$0 sps:$4 sm:$0x11]  }
  0x22   : > { %897 = vrot.lane.b32.xlu0 %v852_v58, %s3178_s21  ;;  %v592_v0 = vor.u32 %v591_v53, %v587_v45  ;;  %v687_v3 = vrot.slane %v685_v55, 1  ;;  %v692_v6 = vrot.slane %v690_v56, 1  ;;  %v678_v7 = vshll.u32 %v3250_v8, 16  ;;  %v3311_v20 = vld [vmem:[%s3229_s19 + $0x14] ss:$0 sps:$4 sm:$0x11]  }
  0x23   : > { %v585_v9 = vsel %vm573_vm1, %v580_v60, %v584_v54  ;;  %v675_v10 = vrot.slane %v673_v61, 1  ;;  %v2798_v12 = vcombine.low %v2631_v52, %v3293_v57  ;;  %v2790_v19 = vcombine.low %v2615_v62, %v3299_v63  ;;  %v3318_v24 = vld [vmem:[%s3229_s19 + $0x80] ss:$0 sps:$4 sm:$0x11]   ;;  %v2669_v40 = vld [vmem:[%s3229_s19 + $0x6c] sm:$0xe] }
  0x24   : > { %v597_v14 = vsel %vm573_vm1, %v592_v0, %v596_v59  ;;  %v688_v15 = vor.u32 %v687_v3, %v683_v47  ;;  %v680_v16 = vrot.slane %v678_v7, 1  ;;  %v1184_v21 = vshrl.u32 %v3236_v2, 16  ;;  %v2661_v43 = vld [vmem:[%s3229_s19 + $0xc] sm:$0xe]  ;;  %v2670_v49 = vld [vmem:[%s3229_s19 + $0x78] sm:$0xe] }
  0x25   : > { %768 = vrot.lane.b32.xlu1 %v597_v14, %s3179_s22  ;;  %v676_v8 = vor.u32 %v675_v10, %v671_v30  ;;  %v1188_v22 = vrot.slane %v1186_v11, 1  ;;  %v1198_v26 = vshll.u32 %v2798_v12, 16  ;;  %v1191_v27 = vshll.u32 %v3306_v13, 16  ;;  %v3329_v11 = vld [vmem:[%s3229_s19 + $0x20] ss:$0 sps:$4 sm:$0x11]  }
  0x26   : > { %766 = vrot.lane.b32.xlu0 %v585_v9, %s3179_s22  ;;  %v693_v25 = vsel %vm573_vm1, %v688_v15, %v692_v6  ;;  %v1088_v28 = vshrl.u32 %v3243_v5, 16  ;;  %v1102_v30 = vshll.u32 %v2790_v19, 16  ;;  %v1092_v32 = vrot.slane %v1090_v17, 1  ;;  %v2662_v53 = vld [vmem:[%s3229_s19 + $0x18] sm:$0xe] }
  0x27   : > { %v681_v29 = vsel %vm573_vm1, %v676_v8, %v680_v16  ;;  %v1095_v2 = vshll.u32 %v3311_v20, 16  ;;  %v1189_v33 = vor.u32 %v1188_v22, %v1184_v21  ;;  %v1193_v34 = vrot.slane %v1191_v27, 1  ;;  %v2693_v54 = vld [vmem:[%s3229_s19 + $0x78] sm:$0xf]  ;;  %v3356_v60 = vld [vmem:[%s3229_s19 + $0x1c] sm:$0xf] }
  0x28   : > { %v1093_v35 = vor.u32 %v1092_v32, %v1088_v28  ;;  %v1196_v36 = vshrl.u32 %v2798_v12, 16  ;;  %v1200_v37 = vrot.slane %v1198_v26, 1  ;;  %v1203_v39 = vshll.u32 %v3318_v24, 16  ;;  %v2677_v55 = vld [vmem:[%s3229_s19 + $0x18] sm:$0xf] }
  0x29   : > { %784 = vrot.lane.b32.xlu1 %v693_v25, %s3179_s22  ;;  %v1097_v5 = vrot.slane %v1095_v2, 1  ;;  %v1100_v17 = vshrl.u32 %v2790_v19, 16  ;;  %v1104_v41 = vrot.slane %v1102_v30, 1  ;;  %v1107_v42 = vshll.u32 %v3329_v11, 16  ;;  %v2695_v7 = vld [vmem:[%s3229_s19 + $0x84] sm:$0xf] }
  0x2a   : > { %782 = vrot.lane.b32.xlu0 %v681_v29, %s3179_s22  ;;  %v2829_v44 = vcombine.low %v2669_v40, %v3233_v1  ;;  %v1194_v45 = vsel %vm573_vm1, %v1189_v33, %v1193_v34  ;;  %v1201_v46 = vor.u32 %v1200_v37, %v1196_v36  ;;  %v1205_v47 = vrot.slane %v1203_v39, 1  ;;  %v3348_v1 = vld [vmem:[%s3229_s19 + $0x7c] sm:$0xf]  ;;  %v3366_v9 = vld [vmem:[%s3229_s19 + $0x88] sm:$0xf] }
  0x2b   : > { %v2821_v48 = vcombine.low %v2661_v43, %v3240_v4  ;;  %v1098_v50 = vsel %vm573_vm1, %v1093_v35, %v1097_v5  ;;  %v1105_v51 = vor.u32 %v1104_v41, %v1100_v17  ;;  %v1109_v52 = vrot.slane %v1107_v42, 1  ;;  %v3373_v14 = vld [vmem:[%s3229_s19 + $0x28] sm:$0xf]  ;;  %v3379_v21 = vld [vmem:[%s3229_s19 + $0x80] ss:$0 sps:$4 sm:$0x11]  }
  0x2c   : > { %v2830_v56 = vcombine.low %v2670_v49, %v3293_v57  ;;  %v1206_v4 = vsel %vm573_vm1, %v1201_v46, %v1205_v47  ;;  %v1383_v58 = vrot.slane %v2829_v44, 1  ;;  %v1384_v59 = vrot.slane %v3306_v13, 1  ;;  %v2679_v13 = vld [vmem:[%s3229_s19 + $0x24] sm:$0xf]  ;;  %v265_v37 = vld [vmem:[%s3229_s19 + $0x78] sm:$0xf] }
  0x2d   : > { %1025 = vrot.lane.b32.xlu1 %v2798_v12, %s3177_s20  ;;  %v2822_v61 = vcombine.low %v2662_v53, %v3299_v63  ;;  %v1110_v62 = vsel %vm573_vm1, %v1105_v51, %v1109_v52  ;;  %v1359_v0 = vrot.slane %v2821_v48, 1  ;;  %v1360_v3 = vrot.slane %v3311_v20, 1  ;;  %v3386_v26 = vld [vmem:[%s3229_s19 + $0x20] ss:$0 sps:$4 sm:$0x11]  }
  0x2e   : > { %1009 = vrot.lane.b32.xlu0 %v2790_v19, %s3177_s20  ;;  %v2845_v57 = vcombine.low %v2693_v54, %v3348_v1  ;;  %v2837_v6 = vcombine.low %v2677_v55, %v3356_v60  ;;  %v1385_v10 = vsel %vm846_vm0, %v1383_v58, %v1384_v59  ;;  %v1386_v63 = vrot.slane %v2830_v56, 1  ;;  %v3392_v34 = vld [vmem:[%s3229_s19 + $0x8c] ss:$0 sps:$4 sm:$0x11]   ;;  %v3401_v39 = vld [vmem:[%s3229_s19 + $0x7c] sm:$0xf] }
  0x2f   : > { %v1387_v12 = vrot.slane %v3318_v24, 1  ;;  %v1361_v15 = vsel %vm846_vm0, %v1359_v0, %v1360_v3  ;;  %v1362_v16 = vrot.slane %v2822_v61, 1  ;;  %v1363_v19 = vrot.slane %v3329_v11, 1  ;;  %v3397_v36 = vld [vmem:[%s3229_s19 + $0x2c] ss:$0 sps:$4 sm:$0x11]  }
  0x30   : > { %v1698_v20 = vshll.u32 %v2845_v57, 16  ;;  %v2846_v8 = vcombine.low %v2695_v7, %v3366_v9  ;;  %v1602_v22 = vshll.u32 %v2837_v6, 16  ;;  %v2838_v24 = vcombine.low %v2679_v13, %v3373_v14  ;;  %v249_v40 = vld [vmem:[%s3229_s19 + $0x18] sm:$0xf]  ;;  %v3405_v17 = vld [vmem:[%s3229_s19 + $0x1c] sm:$0xf] }
  0x31   : > { %1295 = vrot.lane.b32.xlu1 %v1194_v45, %s3180_s23  ;;  %v1388_v25 = vsel %vm846_vm0, %v1386_v63, %v1387_v12  ;;  %v1364_v27 = vsel %vm846_vm0, %v1362_v16, %v1363_v19  ;;  %v1696_v29 = vshrl.u32 %v2845_v57, 16  ;;  %v1703_v32 = vshll.u32 %v3379_v21, 16  ;;  %v3102_v41 = vld [vmem:[%s4555_s1] sm:$0xff]   ;;  %v2733_v42 = vld [vmem:[%s3229_s19 + $0x78] sm:$0xe]  ;;  %v3107_v56 = vld [vmem:[%s4555_s1 + $0x8] sm:$0xff]  }
  0x32   : > { %1279 = vrot.lane.b32.xlu0 %v1098_v50, %s3180_s23  ;;  %v1710_v28 = vshll.u32 %v2846_v8, 16  ;;  %v1700_v30 = vrot.slane %v1698_v20, 1  ;;  %v1614_v2 = vshll.u32 %v2838_v24, 16  ;;  %v1600_v11 = vshrl.u32 %v2837_v6, 16  ;;  %v2725_v47 = vld [vmem:[%s3229_s19 + $0x18] sm:$0xe]  ;;  %2927 = vmatprep.subr.bf16.mxu0 %v3102_v41 }
  0x33   : > { %v1604_v33 = vrot.slane %v1602_v22, 1  ;;  %v1607_v35 = vshll.u32 %v3386_v26, 16  ;;  %v1705_v43 = vrot.slane %v1703_v32, 1  ;;  %v1708_v44 = vshrl.u32 %v2846_v8, 16  ;;  %2965 = vmatprep.subr.bf16.mxu1 %v3102_v41  ;;  %2928 = vmatpush3.bf16.msra.mxu0 %v3102_v41  ;;  %v267_v7 = vld [vmem:[%s3229_s19 + $0x84] sm:$0xf] }
  0x34   : > { %v1701_v5 = vor.u32 %v1700_v30, %v1696_v29  ;;  %v1712_v45 = vrot.slane %v1710_v28, 1  ;;  %v1715_v46 = vshll.u32 %v3392_v34, 16  ;;  %v1612_v48 = vshrl.u32 %v2838_v24, 16  ;;  %2968 = vmatpush3.bf16.msra.mxu1 %v3102_v41  ;;  %v3429_v61 = vld [vmem:[%s3229_s19 + $0x80] ss:$0 sps:$4 sm:$0x11]   ;;  %2929 = vmatprep.subr.bf16.mxu0 %v3107_v56 }
  0x35   : > { %1297 = vrot.lane.b32.xlu1 %v1206_v4, %s3180_s23  ;;  %v1616_v49 = vrot.slane %v1614_v2, 1  ;;  %v1619_v50 = vshll.u32 %v3397_v36, 16  ;;  %v3417_v51 = vcombine.low %v265_v37, %v3401_v39  ;;  %v1605_v52 = vor.u32 %v1604_v33, %v1600_v11  ;;  %2966 = vmatprep.subr.bf16.mxu1 %v3107_v56  ;;  %v251_v13 = vld [vmem:[%s3229_s19 + $0x24] sm:$0xf] }
  0x36   : > { %1281 = vrot.lane.b32.xlu0 %v1110_v62, %s3180_s23  ;;  %v1609_v53 = vrot.slane %v1607_v35, 1  ;;  %v3420_v54 = vcombine.low %v249_v40, %v3405_v17  ;;  %v2877_v55 = vcombine.low %v2733_v42, %v3348_v1  ;;  %v2869_v4 = vcombine.low %v2725_v47, %v3356_v60  ;;  %v2734_v16 = vld [vmem:[%s3229_s19 + $0x84] sm:$0xe]  ;;  %v3471_v40 = vld [vmem:[%s3229_s19 + $0x8c] ss:$0 sps:$4 sm:$0x11]  }
  0x37   : > { %v1713_v58 = vor.u32 %v1712_v45, %v1708_v44  ;;  %v1717_v59 = vrot.slane %v1715_v46, 1  ;;  %v1706_v1 = vsel %vm573_vm1, %v1701_v5, %v1705_v43  ;;  %v1617_v62 = vor.u32 %v1616_v49, %v1612_v48  ;;  %2930 = vmatpush3.bf16.msra.mxu0 %v3107_v56 }
  0x38   : > { %v1621_v0 = vrot.slane %v1619_v50, 1  ;;  %v697_v3 = vshll.u32 %v3417_v51, 16  ;;  %v1610_v60 = vsel %vm573_vm1, %v1605_v52, %v1609_v53  ;;  %v1895_v63 = vrot.slane %v2877_v55, 1  ;;  %2969 = vmatpush3.bf16.msra.mxu1 %v3107_v56  ;;  %v303_v53 = vld [vmem:[%s3229_s19 + $0x78] sm:$0xe] }
  0x39   : > { %1423 = vrot.lane.b32.xlu1 %v1385_v10, %s3181_s24  ;;  %v3441_v10 = vld [vmem:[%s3229_s19 + $0x88] sm:$0xf]  ;;  %v1896_v12 = vrot.slane %v3379_v21, 1  ;;  %v1718_v19 = vsel %vm573_vm1, %v1713_v58, %v1717_v59  ;;  %v1871_v20 = vrot.slane %v2869_v4, 1  ;;  %v702_v22 = vshll.u32 %v3429_v61, 16 }
  0x3a   : > { %1407 = vrot.lane.b32.xlu0 %v1361_v15, %s3181_s24  ;;  %v3446_v15 = vld [vmem:[%s3229_s19 + $0x28] sm:$0xf]  ;;  %v1622_v21 = vsel %vm573_vm1, %v1617_v62, %v1621_v0  ;;  %v3458_v28 = vcombine.low %v267_v7, %v3441_v10  ;;  %v599_v29 = vshrl.u32 %v3420_v54, 16  ;;  %v2878_v2 = vcombine.low %v2734_v16, %v3366_v9  ;;  %v3476_v9 = vld [vmem:[%s3229_s19 + $0x2c] ss:$0 sps:$4 sm:$0x11]  }
  0x3b   : > { %v3463_v32 = vcombine.low %v251_v13, %v3446_v15  ;;  %v704_v33 = vrot.slane %v702_v22, 1  ;;  %v1897_v35 = vsel %vm846_vm0, %v1895_v63, %v1896_v12  ;;  %v1899_v45 = vrot.slane %v3392_v34, 1  ;;  %v296_v63 = vld [vmem:[%s3229_s19 + $0x24] sm:$0xe] }
  0x3c   : > { %v709_v5 = vshll.u32 %v3458_v28, 16  ;;  %v1898_v44 = vrot.slane %v2878_v2, 1  ;;  %v1875_v47 = vrot.slane %v3397_v36, 1  ;;  %v707_v49 = vshrl.u32 %v3458_v28, 16  ;;  %v295_v36 = vld [vmem:[%s3229_s19 + $0x18] sm:$0xe] }
  0x3d   : > { %1425 = vrot.lane.b32.xlu1 %v1388_v25, %s3181_s24  ;;  %v695_v25 = vshrl.u32 %v3417_v51, 16  ;;  %v714_v52 = vshll.u32 %v3471_v40, 16  ;;  %v611_v56 = vshrl.u32 %v3463_v32, 16  ;;  %v618_v4 = vshll.u32 %v3476_v9, 16 }
  0x3e   : > { %1409 = vrot.lane.b32.xlu0 %v1364_v27, %s3181_s24  ;;  %v699_v27 = vrot.slane %v697_v3, 1  ;;  %v711_v50 = vrot.slane %v709_v5, 1  ;;  %v1900_v58 = vsel %vm846_vm0, %v1898_v44, %v1899_v45  ;;  %v2783_v62 = vcombine.low %v303_v53, %v3401_v39  ;;  %v304_v3 = vld [vmem:[%s3229_s19 + $0x84] sm:$0xe] }
  0x3f   : > { %v2775_v0 = vcombine.low %v295_v36, %v3405_v17  ;;  %v620_v7 = vrot.slane %v618_v4, 1  ;;  %v878_v12 = vrot.slane %v3429_v61, 1  ;;  %v2784_v16 = vcombine.low %v304_v3, %v3441_v10 }
  0x40   : > { %v700_v37 = vor.u32 %v699_v27, %v695_v25  ;;  %v712_v59 = vor.u32 %v711_v50, %v707_v49  ;;  %v877_v17 = vrot.slane %v2783_v62, 1  ;;  %v2776_v61 = vcombine.low %v296_v63, %v3446_v15  ;;  %v3523_v15 = vld [vmem:[%s3229_s19 + $0x94] sm:$0xf]  ;;  %v2663_v62 = vld [vmem:[%s3229_s19 + $0x24] sm:$0xe] }
  0x41   : > { %1535 = vrot.lane.b32.xlu1 %v2845_v57, %s3182_s27  ;;  %v3435_v57 = vld [vmem:[%s3229_s19 + $0x20] ss:$0 sps:$4 sm:$0x11]   ;;  %v880_v10 = vrot.slane %v2784_v16, 1 }
  0x42   : > { %1519 = vrot.lane.b32.xlu0 %v2837_v6, %s3182_s27  ;;  %v601_v6 = vshll.u32 %v3420_v54, 16  ;;  %v705_v48 = vsel %vm573_vm1, %v700_v37, %v704_v33  ;;  %v854_v13 = vrot.slane %v3435_v57, 1  ;;  %v879_v27 = vsel %vm846_vm0, %v877_v17, %v878_v12  ;;  %v2619_v33 = vld [vmem:[%s3229_s19 + $0x30] sm:$0xf] }
  0x43   : > { %v856_v2 = vrot.slane %v2776_v61, 1  ;;  %v2672_v12 = vld [vmem:[%s3229_s19 + $0x90] sm:$0xe] }
  0x44   : > { %v603_v30 = vrot.slane %v601_v6, 1  ;;  %v2832_v61 = vcombine.low %v2672_v12, %v3523_v15 }
  0x45   : > { %1537 = vrot.lane.b32.xlu1 %v2846_v8, %s3182_s27  ;;  %v1872_v8 = vrot.slane %v3386_v26, 1  ;;  %v606_v26 = vshll.u32 %v3435_v57, 16  ;;  %v2617_v57 = vld [vmem:[%s3229_s19 + $0x24] sm:$0xf] }
  0x46   : > { %1521 = vrot.lane.b32.xlu0 %v2838_v24, %s3182_s27  ;;  %v2726_v24 = vld [vmem:[%s3229_s19 + $0x24] sm:$0xe]  ;;  %v604_v42 = vor.u32 %v603_v30, %v599_v29  ;;  %v2635_v30 = vld [vmem:[%s3229_s19 + $0x90] sm:$0xf] }
  0x47   : > { %v2870_v11 = vcombine.low %v2726_v24, %v3373_v14  ;;  %v1873_v41 = vsel %vm846_vm0, %v1871_v20, %v1872_v8  ;;  %v608_v43 = vrot.slane %v606_v26, 1  ;;  %v613_v14 = vshll.u32 %v3463_v32, 16  ;;  %v2633_v20 = vld [vmem:[%s3229_s19 + $0x84] sm:$0xf]  ;;  %v3507_v8 = vld [vmem:[%s3229_s19 + $0x88] sm:$0xf] }
  0x48   : > { %v3513_v24 = vld [vmem:[%s3229_s19 + $0x28] sm:$0xf]  ;;  %v2799_v25 = vcombine.low %v2633_v20, %v3507_v8 }
  0x49   : > { %1807 = vrot.lane.b32.xlu1 %v1706_v1, %s3183_s30  ;;  %v1874_v46 = vrot.slane %v2870_v11, 1  ;;  %v609_v55 = vsel %vm573_vm1, %v604_v42, %v608_v43  ;;  %v615_v34 = vrot.slane %v613_v14, 1  ;;  %v716_v1 = vrot.slane %v714_v52, 1  ;;  %v3062_v43 = vld [vmem:[%s3229_s19 + $0x8c] ss:$0 sps:$4 sm:$0x11]  }
  0x4a   : > { %1791 = vrot.lane.b32.xlu0 %v1610_v60, %s3183_s30  ;;  %v2791_v29 = vcombine.low %v2617_v57, %v3513_v24  ;;  %v857_v11 = vrot.slane %v3476_v9, 1  ;;  %v1210_v37 = vshll.u32 %v2799_v25, 16  ;;  %v3539_v14 = vld [vmem:[%s3229_s19 + $0x2c] ss:$0 sps:$4 sm:$0x11]   ;;  %v1208_v45 = vshrl.u32 %v2799_v25, 16 }
  0x4b   : > { %v1876_v60 = vsel %vm846_vm0, %v1874_v46, %v1875_v47  ;;  %v616_v6 = vor.u32 %v615_v34, %v611_v56  ;;  %v717_v39 = vsel %vm573_vm1, %v712_v59, %v716_v1  ;;  %v1215_v49 = vshll.u32 %v3062_v43, 16  ;;  %v3544_v52 = vld [vmem:[%s3229_s19 + $0x98] ss:$0 sps:$4 sm:$0x11]   ;;  %v2671_v56 = vld [vmem:[%s3229_s19 + $0x84] sm:$0xe] }
  0x4c   : > { %v858_v9 = vsel %vm846_vm0, %v856_v2, %v857_v11  ;;  %v1212_v46 = vrot.slane %v1210_v37, 1  ;;  %v1112_v47 = vshrl.u32 %v2791_v29, 16  ;;  %v1119_v53 = vshll.u32 %v3539_v14, 16  ;;  %v2697_v57 = vld [vmem:[%s3229_s19 + $0x90] sm:$0xf] }
  0x4d   : > { %1809 = vrot.lane.b32.xlu1 %v1718_v19, %s3183_s30  ;;  %v853_v19 = vrot.slane %v2775_v0, 1  ;;  %v621_v22 = vsel %vm573_vm1, %v616_v6, %v620_v7  ;;  %v1217_v36 = vrot.slane %v1215_v49, 1  ;;  %v1227_v1 = vshll.u32 %v3544_v52, 16  ;;  %v2699_v11 = vld [vmem:[%s3229_s19 + $0x9c] sm:$0xf] }
  0x4e   : > { %1793 = vrot.lane.b32.xlu0 %v1622_v21, %s3183_s30  ;;  %v881_v21 = vrot.slane %v3471_v40, 1  ;;  %v2800_v40 = vcombine.low %v2635_v30, %v3523_v15  ;;  %v1213_v34 = vor.u32 %v1212_v46, %v1208_v45  ;;  %v1121_v0 = vrot.slane %v1119_v53, 1  ;;  %v3577_v15 = vld [vmem:[%s3229_s19 + $0x34] sm:$0xf]  ;;  %v3594_v45 = vld [vmem:[%s3229_s19 + $0x40] sm:$0xf] }
  0x4f   : > { %v855_v26 = vsel %vm846_vm0, %v853_v19, %v854_v13  ;;  %v2831_v7 = vcombine.low %v2671_v56, %v3507_v8  ;;  %v2823_v63 = vcombine.low %v2663_v62, %v3513_v24  ;;  %v3568_v24 = vld [vmem:[%s3229_s19 + $0x94] sm:$0xf]  ;;  %v3597_v46 = vld [vmem:[%s3229_s19 + $0x98] ss:$0 sps:$4 sm:$0x11]  }
  0x50   : > { %v882_v5 = vsel %vm846_vm0, %v880_v10, %v881_v21  ;;  %v1222_v44 = vshll.u32 %v2800_v40, 16  ;;  %v1220_v4 = vshrl.u32 %v2800_v40, 16  ;;  %v1218_v13 = vsel %vm573_vm1, %v1213_v34, %v1217_v36  ;;  %v3603_v49 = vld [vmem:[%s3229_s19 + $0x38] ss:$0 sps:$4 sm:$0x11]  }
  0x51   : > { %1935 = vrot.lane.b32.xlu1 %v1897_v35, %s3184_s4  ;;  %v3529_v35 = vld [vmem:[%s3229_s19 + $0x34] sm:$0xf]  ;;  %v1389_v8 = vrot.slane %v2831_v7, 1  ;;  %v1390_v21 = vrot.slane %v3062_v43, 1  ;;  %v2847_v2 = vcombine.low %v2697_v57, %v3568_v24  ;;  %v1631_v62 = vshll.u32 %v3603_v49, 16 }
  0x52   : > { %1919 = vrot.lane.b32.xlu0 %v1873_v41, %s3184_s4  ;;  %v1114_v41 = vshll.u32 %v2791_v29, 16  ;;  %v2792_v42 = vcombine.low %v2619_v33, %v3529_v35  ;;  %v1224_v59 = vrot.slane %v1222_v44, 1  ;;  %v3582_v33 = vld [vmem:[%s3229_s19 + $0xa0] sm:$0xf] }
  0x53   : > { %v1391_v37 = vsel %vm846_vm0, %v1389_v8, %v1390_v21  ;;  %v1722_v44 = vshll.u32 %v2847_v2, 16  ;;  %v1720_v56 = vshrl.u32 %v2847_v2, 16  ;;  %v1633_v8 = vrot.slane %v1631_v62, 1 }
  0x54   : > { %v1116_v50 = vrot.slane %v1114_v41, 1  ;;  %v1124_v3 = vshrl.u32 %v2792_v42, 16  ;;  %v1225_v16 = vor.u32 %v1224_v59, %v1220_v4  ;;  %v1727_v4 = vshll.u32 %v3597_v46, 16  ;;  %v3614_v59 = vld [vmem:[%s3229_s19 + $0x44] ss:$0 sps:$4 sm:$0x11]  }
  0x55   : > { %786 = vrot.lane.b32.xlu1 %v705_v48, %s3179_s22  ;;  %v1126_v48 = vshll.u32 %v2792_v42, 16  ;;  %v1724_v34 = vrot.slane %v1722_v44, 1  ;;  %v2736_v44 = vld [vmem:[%s3229_s19 + $0x9c] sm:$0xe] }
  0x56   : > { %770 = vrot.lane.b32.xlu0 %v609_v55, %s3179_s22  ;;  %v3548_v55 = vld [vmem:[%s3229_s19 + $0x38] ss:$0 sps:$4 sm:$0x11]  }
  0x57   : > { %v1131_v6 = vshll.u32 %v3548_v55, 16  ;;  %v1369_v43 = vrot.slane %v3548_v55, 1  ;;  %v2735_v55 = vld [vmem:[%s3229_s19 + $0x90] sm:$0xe] }
  0x58   : > { %v2879_v7 = vcombine.low %v2735_v55, %v3568_v24  ;;  %v1878_v55 = vrot.slane %v3603_v49, 1 }
  0x59   : > { %1937 = vrot.lane.b32.xlu1 %v1900_v58, %s3184_s4  ;;  %v1117_v58 = vor.u32 %v1116_v50, %v1112_v47  ;;  %v1133_v20 = vrot.slane %v1131_v6, 1  ;;  %v3112_v6 = vld [vmem:[%s4555_s1 + $0x10] ss:$0 sps:$4 sm:$0x33]  }
  0x5a   : > { %1921 = vrot.lane.b32.xlu0 %v1876_v60, %s3184_s4  ;;  %v1128_v60 = vrot.slane %v1126_v48, 1  ;;  %2971 = vmatprep.subr.msk.bf16.mxu0 %vm2275_vm2, %v3112_v6 }
  0x5b   : > { %v1122_v17 = vsel %vm573_vm1, %v1117_v58, %v1121_v0  ;;  %v3611_v58 = vld [vmem:[%s3229_s19 + $0xa4] ss:$0 sps:$4 sm:$0x11]   ;;  %v269_v0 = vld [vmem:[%s3229_s19 + $0x90] sm:$0xf]  ;;  %2972 = vmatprep.subr.msk.bf16.mxu1 %vm2275_vm2, %v3112_v6 }
  0x5c   : > { %v1129_v19 = vor.u32 %v1128_v60, %v1124_v3  ;;  %v3620_v60 = vld [vmem:[%s3229_s19 + $0x94] sm:$0xf] }
  0x5d   : > { %788 = vrot.lane.b32.xlu1 %v717_v39, %s3179_s22  ;;  %v1229_v39 = vrot.slane %v1227_v1, 1  ;;  %v3635_v57 = vcombine.low %v269_v0, %v3620_v60 }
  0x5e   : > { %772 = vrot.lane.b32.xlu0 %v621_v22, %s3179_s22  ;;  %v2664_v22 = vld [vmem:[%s3229_s19 + $0x30] sm:$0xe]  ;;  %v1134_v30 = vsel %vm573_vm1, %v1129_v19, %v1133_v20  ;;  %v1739_v19 = vshll.u32 %v3611_v58, 16 }
  0x5f   : > { %v1230_v10 = vsel %vm573_vm1, %v1225_v16, %v1229_v39  ;;  %v3628_v16 = vld [vmem:[%s3229_s19 + $0x34] sm:$0xf]  ;;  %v1729_v39 = vrot.slane %v1727_v4, 1  ;;  %v2727_v20 = vld [vmem:[%s3229_s19 + $0x30] sm:$0xe]  ;;  %4562 = vst [vmem:[#allocation2_spill] sm:$0xff] %v3635_v57 }
  0x61   : > { %915 = vrot.lane.b32.xlu1 %v879_v27, %s3178_s21  ;;  %v1366_v27 = vrot.slane %v3539_v14, 1  ;;  %v2683_v14 = vld [vmem:[%s3229_s19 + $0x3c] sm:$0xf] }
  0x62   : > { %899 = vrot.lane.b32.xlu0 %v855_v26, %s3178_s21  ;;  %v2681_v26 = vld [vmem:[%s3229_s19 + $0x30] sm:$0xf]  ;;  %v2840_v53 = vcombine.low %v2683_v14, %v3594_v45  ;;  %v3659_v14 = vld [vmem:[%s3229_s19 + $0xa0] sm:$0xf] }
  0x64   : > { %v1638_v3 = vshll.u32 %v2840_v53, 16 }
  0x65   : > { %917 = vrot.lane.b32.xlu1 %v882_v5, %s3178_s21  ;;  %v2839_v5 = vcombine.low %v2681_v26, %v3577_v15  ;;  %v3644_v26 = vld [vmem:[%s3229_s19 + $0x98] ss:$0 sps:$4 sm:$0x11]  }
  0x66   : > { %901 = vrot.lane.b32.xlu0 %v858_v9, %s3178_s21  ;;  %v2848_v9 = vcombine.low %v2699_v11, %v3582_v33  ;;  %v1640_v24 = vrot.slane %v1638_v3, 1  ;;  %v1901_v11 = vrot.slane %v2879_v7, 1  ;;  %v726_v4 = vshll.u32 %v3644_v26, 16 }
  0x67   : > { %v1626_v48 = vshll.u32 %v2839_v5, 16  ;;  %v1624_v36 = vshrl.u32 %v2839_v5, 16  ;;  %v2880_v7 = vcombine.low %v2736_v44, %v3582_v33 }
  0x68   : > { %v1732_v12 = vshrl.u32 %v2848_v9, 16 }
  0x69   : > { %1027 = vrot.lane.b32.xlu1 %v2799_v25, %s3177_s20  ;;  %v1365_v25 = vrot.slane %v2823_v63, 1  ;;  %v1628_v1 = vrot.slane %v1626_v48, 1  ;;  %v1725_v63 = vor.u32 %v1724_v34, %v1720_v56  ;;  %v3664_v48 = vld [vmem:[%s3229_s19 + $0x40] sm:$0xf]  ;;  %v719_v56 = vshrl.u32 %v3635_v57, 16 }
  0x6a   : > { %1011 = vrot.lane.b32.xlu0 %v2791_v29, %s3177_s20  ;;  %v2824_v29 = vcombine.low %v2664_v22, %v3529_v35  ;;  %v1392_v35 = vrot.slane %v2832_v61, 1  ;;  %v1636_v61 = vshrl.u32 %v2840_v53, 16 }
  0x6b   : > { %v1367_v41 = vsel %vm846_vm0, %v1365_v25, %v1366_v27  ;;  %v1629_v22 = vor.u32 %v1628_v1, %v1624_v36  ;;  %v2277_v25 = vsel %vm2275_vm2, %v3112_v6, 0  ;;  %v2871_v27 = vcombine.low %v2727_v20, %v3577_v15 }
  0x6c   : > { %2932 = vmatpush3.bf16.msra.mxu0 %v2277_v25  ;;  %2970 = vmatpush3.bf16.msra.mxu1 %v2277_v25  ;;  %v721_v15 = vshll.u32 %v3635_v57, 16  ;;  %v1905_v25 = vrot.slane %v3611_v58, 1 }
  0x6d   : > { %1029 = vrot.lane.b32.xlu1 %v2800_v40, %s3177_s20  ;;  %v1393_v40 = vrot.slane %v3544_v52, 1  ;;  %v1734_v52 = vshll.u32 %v2848_v9, 16 }
  0x6e   : > { %1013 = vrot.lane.b32.xlu0 %v2792_v42, %s3177_s20  ;;  %v1368_v42 = vrot.slane %v2824_v29, 1  ;;  %v723_v34 = vrot.slane %v721_v15, 1  ;;  %v305_v15 = vld [vmem:[%s3229_s19 + $0x90] sm:$0xe] }
  0x6f   : > { %v1394_v47 = vsel %vm846_vm0, %v1392_v35, %v1393_v40  ;;  %v3651_v35 = vld [vmem:[%s3229_s19 + $0x38] ss:$0 sps:$4 sm:$0x11]   ;;  %v1634_v40 = vsel %vm573_vm1, %v1629_v22, %v1633_v8 }
  0x70   : > { %v1370_v50 = vsel %vm846_vm0, %v1368_v42, %v1369_v43  ;;  %v630_v36 = vshll.u32 %v3651_v35, 16 }
  0x71   : > { %1299 = vrot.lane.b32.xlu1 %v1218_v13, %s3180_s23  ;;  %v253_v13 = vld [vmem:[%s3229_s19 + $0x30] sm:$0xf] }
  0x72   : > { %1283 = vrot.lane.b32.xlu0 %v1122_v17, %s3180_s23  ;;  %v1736_v17 = vrot.slane %v1734_v52, 1  ;;  %v3639_v21 = vcombine.low %v253_v13, %v3628_v16  ;;  %v724_v13 = vor.u32 %v723_v34, %v719_v56 }
  0x74   : > { %4563 = vst [vmem:[#allocation3_spill] sm:$0xff] %v3639_v21  ;;  %v1737_v29 = vor.u32 %v1736_v17, %v1732_v12  ;;  %v625_v43 = vshll.u32 %v3639_v21, 16  ;;  %v623_v0 = vshrl.u32 %v3639_v21, 16  ;;  %v632_v17 = vrot.slane %v630_v36, 1 }
  0x75   : > { %1301 = vrot.lane.b32.xlu1 %v1230_v10, %s3180_s23  ;;  %v1643_v10 = vshll.u32 %v3614_v59, 16 }
  0x76   : > { %1285 = vrot.lane.b32.xlu0 %v1134_v30, %s3180_s23  ;;  %v1741_v30 = vrot.slane %v1739_v19, 1  ;;  %v627_v3 = vrot.slane %v625_v43, 1  ;;  %v3692_v19 = vld [vmem:[%s3229_s19 + $0xa4] ss:$0 sps:$4 sm:$0x11]  }
  0x77   : > { %v1645_v42 = vrot.slane %v1643_v10, 1  ;;  %v1904_v10 = vrot.slane %v2880_v7, 1  ;;  %v297_v43 = vld [vmem:[%s3229_s19 + $0x30] sm:$0xe] }
  0x78   : > { %v1742_v52 = vsel %vm573_vm1, %v1737_v29, %v1741_v30  ;;  %v628_v8 = vor.u32 %v627_v3, %v623_v0  ;;  %v1881_v29 = vrot.slane %v3614_v59, 1  ;;  %v2777_v34 = vcombine.low %v297_v43, %v3628_v16  ;;  %v2637_v3 = vld [vmem:[%s3229_s19 + $0x9c] sm:$0xf] }
  0x79   : > { %1427 = vrot.lane.b32.xlu1 %v1391_v37, %s3181_s24  ;;  %v1902_v37 = vrot.slane %v3597_v46, 1  ;;  %v2728_v46 = vld [vmem:[%s3229_s19 + $0x3c] sm:$0xe]  ;;  %v1906_v44 = vsel %vm846_vm0, %v1904_v10, %v1905_v25  ;;  %v884_v0 = vrot.slane %v3644_v26, 1  ;;  %v2639_v25 = vld [vmem:[%s3229_s19 + $0xa8] sm:$0xf] }
  0x7a   : > { %1411 = vrot.lane.b32.xlu0 %v1367_v41, %s3181_s24  ;;  %v1641_v41 = vor.u32 %v1640_v24, %v1636_v61 }
  0x7b   : > { %v1903_v12 = vsel %vm846_vm0, %v1901_v11, %v1902_v37  ;;  %v738_v37 = vshll.u32 %v3692_v19, 16 }
  0x7c   : > { %v1646_v62 = vsel %vm573_vm1, %v1641_v41, %v1645_v42 }
  0x7d   : > { %1429 = vrot.lane.b32.xlu1 %v1394_v47, %s3181_s24  ;;  %v255_v47 = vld [vmem:[%s3229_s19 + $0x3c] sm:$0xf] }
  0x7e   : > { %1413 = vrot.lane.b32.xlu0 %v1370_v50, %s3181_s24  ;;  %v3682_v49 = vcombine.low %v255_v47, %v3664_v48 }
  0x80   : > { %4565 = vst [vmem:[#allocation5_spill] sm:$0xff] %v3682_v49  ;;  %v637_v61 = vshll.u32 %v3682_v49, 16  ;;  %v635_v41 = vshrl.u32 %v3682_v49, 16 }
  0x81   : > { %1539 = vrot.lane.b32.xlu1 %v2847_v2, %s3182_s27  ;;  %v1730_v2 = vsel %vm573_vm1, %v1725_v63, %v1729_v39  ;;  %v2872_v63 = vcombine.low %v2728_v46, %v3594_v45  ;;  %v728_v39 = vrot.slane %v726_v4, 1  ;;  %v3699_v45 = vld [vmem:[%s3229_s19 + $0x44] ss:$0 sps:$4 sm:$0x11]   ;;  %v740_v46 = vrot.slane %v738_v37, 1 }
  0x82   : > { %1523 = vrot.lane.b32.xlu0 %v2839_v5, %s3182_s27  ;;  %v639_v42 = vrot.slane %v637_v61, 1  ;;  %v642_v58 = vshll.u32 %v3699_v45, 16  ;;  %v306_v4 = vld [vmem:[%s3229_s19 + $0x9c] sm:$0xe] }
  0x83   : > { %v729_v30 = vsel %vm573_vm1, %v724_v13, %v728_v39  ;;  %v859_v39 = vrot.slane %v2777_v34, 1 }
  0x84   : > { %v644_v56 = vrot.slane %v642_v58, 1 }
  0x85   : > { %1541 = vrot.lane.b32.xlu1 %v2848_v9, %s3182_s27  ;;  %v271_v9 = vld [vmem:[%s3229_s19 + $0x9c] sm:$0xf] }
  0x86   : > { %1525 = vrot.lane.b32.xlu0 %v2840_v53, %s3182_s27  ;;  %v1877_v53 = vrot.slane %v2871_v27, 1  ;;  %v3677_v1 = vcombine.low %v271_v9, %v3659_v14  ;;  %v1880_v27 = vrot.slane %v2872_v63, 1  ;;  %v2785_v9 = vcombine.low %v305_v15, %v3620_v60  ;;  %v298_v60 = vld [vmem:[%s3229_s19 + $0x3c] sm:$0xe]  ;;  %v2623_v15 = vld [vmem:[%s3229_s19 + $0x48] sm:$0xf] }
  0x87   : > { %v2786_v63 = vcombine.low %v306_v4, %v3659_v14  ;;  %v2778_v26 = vcombine.low %v298_v60, %v3664_v48 }
  0x88   : > { %4564 = vst [vmem:[#allocation4_spill] sm:$0xff] %v3677_v1  ;;  %v733_v20 = vshll.u32 %v3677_v1, 16  ;;  %v1879_v33 = vsel %vm846_vm0, %v1877_v53, %v1878_v55  ;;  %v1882_v53 = vsel %vm846_vm0, %v1880_v27, %v1881_v29  ;;  %v640_v55 = vor.u32 %v639_v42, %v635_v41  ;;  %v3758_v27 = vld [vmem:[%s3229_s19 + $0xac] sm:$0xf] }
  0x89   : > { %v3654_v5 = vpop.permute.xlu1 %1023  ;;  %1811 = vrot.lane.b32.xlu1 %v1730_v2, %s3183_s30  ;;  %v731_v2 = vshrl.u32 %v3677_v1, 16  ;;  %v886_v10 = vrot.slane %v2786_v63, 1  ;;  %v2802_v41 = vcombine.low %v2639_v25, %v3758_v27  ;;  %v3773_v42 = vld [vmem:[%s3229_s19 + $0xa4] ss:$0 sps:$4 sm:$0x11]  }
  0x8a   : > { %v3668_v50 = vpop.permute.xlu0 %1007  ;;  %1795 = vrot.lane.b32.xlu0 %v1634_v40, %s3183_s30  ;;  %v735_v11 = vrot.slane %v733_v20, 1  ;;  %v633_v40 = vsel %vm573_vm1, %v628_v8, %v632_v17  ;;  %v645_v13 = vsel %vm573_vm1, %v640_v55, %v644_v56  ;;  %v860_v17 = vrot.slane %v3651_v35, 1  ;;  %v2621_v20 = vld [vmem:[%s3229_s19 + $0x3c] sm:$0xf] }
  0x8b   : > { %v887_v35 = vrot.slane %v3692_v19, 1  ;;  %v1246_v55 = vshll.u32 %v2802_v41, 16  ;;  %v1239_v34 = vshll.u32 %v3773_v42, 16  ;;  %v3796_v63 = vld [vmem:[%s3229_s19 + $0x50] ss:$0 sps:$4 sm:$0x11]  }
  0x8c   : > { %v736_v47 = vor.u32 %v735_v11, %v731_v2  ;;  %v862_v2 = vrot.slane %v2778_v26, 1  ;;  %v863_v11 = vrot.slane %v3699_v45, 1  ;;  %v2673_v26 = vld [vmem:[%s3229_s19 + $0x9c] sm:$0xe] }
  0x8d   : > { %v3684_v6 = vpop.permute.xlu1 %911  ;;  %1813 = vrot.lane.b32.xlu1 %v1742_v52, %s3183_s30  ;;  %v888_v58 = vsel %vm846_vm0, %v886_v10, %v887_v35  ;;  %v1248_v10 = vrot.slane %v1246_v55, 1  ;;  %v2665_v25 = vld [vmem:[%s3229_s19 + $0x3c] sm:$0xe] }
  0x8e   : > { %1797 = vrot.lane.b32.xlu0 %v1646_v62, %s3183_s30  ;;  %v883_v62 = vrot.slane %v2785_v9, 1  ;;  %v741_v7 = vsel %vm573_vm1, %v736_v47, %v740_v46  ;;  %v3778_v9 = vld [vmem:[%s3229_s19 + $0x44] ss:$0 sps:$4 sm:$0x11]  }
  0x8f   : > { %v3695_v22 = vpop.permute.xlu0 %895 }
  0x90   : > { %v885_v61 = vsel %vm846_vm0, %v883_v62, %v884_v0  ;;  %v3790_v62 = vld [vmem:[%s3229_s19 + $0xb0] ss:$0 sps:$4 sm:$0x11]  }
  0x91   : > { %1939 = vrot.lane.b32.xlu1 %v1903_v12, %s3184_s4  ;;  %v3737_v12 = vld [vmem:[%s3229_s19 + $0xa0] sm:$0xf]  ;;  %v1251_v35 = vshll.u32 %v3790_v62, 16 }
  0x92   : > { %v3703_v24 = vpop.permute.xlu1 %913  ;;  %1923 = vrot.lane.b32.xlu0 %v1879_v33, %s3184_s4  ;;  %v3746_v33 = vld [vmem:[%s3229_s19 + $0x40] sm:$0xf]  ;;  %v2801_v14 = vcombine.low %v2637_v3, %v3737_v12 }
  0x93   : > { %v2793_v48 = vcombine.low %v2621_v20, %v3746_v33  ;;  %v1241_v20 = vrot.slane %v1239_v34, 1  ;;  %v1253_v34 = vrot.slane %v1251_v35, 1 }
  0x94   : > { %v3715_v59 = vpop.permute.xlu0 %897  ;;  %v1234_v19 = vshll.u32 %v2801_v14, 16 }
  0x95   : > { %790 = vrot.lane.b32.xlu1 %v729_v30, %s3179_s22  ;;  %v861_v30 = vsel %vm846_vm0, %v859_v39, %v860_v17  ;;  %v1138_v43 = vshll.u32 %v2793_v48, 16  ;;  %v1136_v4 = vshrl.u32 %v2793_v48, 16  ;;  %v1244_v17 = vshrl.u32 %v2802_v41, 16 }
  0x96   : > { %774 = vrot.lane.b32.xlu0 %v633_v40, %s3179_s22  ;;  %v3768_v40 = vld [vmem:[%s3229_s19 + $0x4c] sm:$0xf]  ;;  %v1236_v56 = vrot.slane %v1234_v19, 1 }
  0x97   : > { %v3722_v52 = vpop.permute.xlu1 %768  ;;  %v2794_v47 = vcombine.low %v2623_v15, %v3768_v40  ;;  %v1140_v60 = vrot.slane %v1138_v43, 1  ;;  %v1155_v15 = vshll.u32 %v3796_v63, 16  ;;  %v3812_v43 = vld [vmem:[%s3229_s19 + $0xac] sm:$0xf] }
  0x98   : > { %v3727_v36 = vpop.permute.xlu0 %766 }
  0x99   : > { %1941 = vrot.lane.b32.xlu1 %v1906_v44, %s3184_s4  ;;  %v864_v44 = vsel %vm846_vm0, %v862_v2, %v863_v11  ;;  %v1150_v3 = vshll.u32 %v2794_v47, 16  ;;  %v1148_v11 = vshrl.u32 %v2794_v47, 16 }
  0x9a   : > { %1925 = vrot.lane.b32.xlu0 %v1882_v53, %s3184_s4  ;;  %v1232_v53 = vshrl.u32 %v2801_v14, 16 }
  0x9b   : > { %v3739_v16 = vpop.permute.xlu1 %784 }
  0x9c   : > { %v3748_v8 = vpop.permute.xlu0 %782  ;;  %v1237_v39 = vor.u32 %v1236_v56, %v1232_v53  ;;  %v2674_v53 = vld [vmem:[%s3229_s19 + $0xa8] sm:$0xe]  ;;  %v1249_v56 = vor.u32 %v1248_v10, %v1244_v17  ;;  %v3838_v10 = vld [vmem:[%s3229_s19 + $0xb8] sm:$0xf] }
  0x9d   : > { %792 = vrot.lane.b32.xlu1 %v741_v7, %s3179_s22  ;;  %v1143_v7 = vshll.u32 %v3778_v9, 16  ;;  %v2834_v17 = vcombine.low %v2674_v53, %v3758_v27  ;;  %v3846_v27 = vld [vmem:[%s3229_s19 + $0x58] sm:$0xf] }
  0x9e   : > { %776 = vrot.lane.b32.xlu0 %v645_v13, %s3179_s22  ;;  %v1242_v55 = vsel %vm573_vm1, %v1237_v39, %v1241_v20  ;;  %v3831_v39 = vld [vmem:[%s3229_s19 + $0x4c] sm:$0xf]  ;;  %v1396_v20 = vrot.slane %v3773_v42, 1 }
  0x9f   : > { %v3760_v29 = vpop.permute.xlu1 %1025  ;;  %v1145_v2 = vrot.slane %v1143_v7, 1  ;;  %v1157_v7 = vrot.slane %v1155_v15, 1 }
  0xa0   : > { %v3764_v37 = vpop.permute.xlu0 %1009 }
  0xa1   : > { %919 = vrot.lane.b32.xlu1 %v885_v61, %s3178_s21  ;;  %v1141_v61 = vor.u32 %v1140_v60, %v1136_v4  ;;  %v2666_v4 = vld [vmem:[%s3229_s19 + $0x48] sm:$0xe] }
  0xa2   : > { %903 = vrot.lane.b32.xlu0 %v861_v30, %s3178_s21  ;;  %v2826_v35 = vcombine.low %v2666_v4, %v3768_v40  ;;  %v3856_v40 = vld [vmem:[%s3229_s19 + $0xb0] ss:$0 sps:$4 sm:$0x11]   ;;  %v1399_v4 = vrot.slane %v3790_v62, 1 }
  0xa3   : > { %v3780_v45 = vpop.permute.xlu1 %1295 }
  0xa4   : > { %v3784_v46 = vpop.permute.xlu0 %1279 }
  0xa5   : > { %921 = vrot.lane.b32.xlu1 %v888_v58, %s3178_s21  ;;  %v2701_v58 = vld [vmem:[%s3229_s19 + $0xa8] sm:$0xf] }
  0xa6   : > { %905 = vrot.lane.b32.xlu0 %v864_v44, %s3178_s21  ;;  %v2825_v44 = vcombine.low %v2665_v25, %v3746_v33  ;;  %v1254_v25 = vsel %vm573_vm1, %v1249_v56, %v1253_v34 }
  0xa7   : > { %v3792_v0 = vpop.permute.xlu1 %1297 }
  0xa8   : > { %v3798_v13 = vpop.permute.xlu0 %1281 }
  0xa9   : > { %1031 = vrot.lane.b32.xlu1 %v2801_v14, %s3177_s20  ;;  %v1152_v14 = vrot.slane %v1150_v3, 1  ;;  %v1146_v3 = vsel %vm573_vm1, %v1141_v61, %v1145_v2  ;;  %v2703_v61 = vld [vmem:[%s3229_s19 + $0xb4] sm:$0xf]  ;;  %v1371_v2 = vrot.slane %v2825_v44, 1 }
  0xaa   : > { %1015 = vrot.lane.b32.xlu0 %v2793_v48, %s3177_s20  ;;  %v2833_v48 = vcombine.low %v2673_v26, %v3737_v12  ;;  %v3861_v44 = vcombine.low %v2703_v61, %v3838_v10 }
  0xab   : > { %v3805_v30 = vpop.permute.xlu1 %1423  ;;  %v1153_v12 = vor.u32 %v1152_v14, %v1148_v11  ;;  %v1372_v11 = vrot.slane %v3778_v9, 1  ;;  %v2687_v14 = vld [vmem:[%s3229_s19 + $0x54] sm:$0xf] }
  0xac   : > { %v3808_v19 = vpop.permute.xlu0 %1407  ;;  %v1395_v26 = vrot.slane %v2833_v48, 1  ;;  %v3866_v56 = vcombine.low %v2687_v14, %v3846_v27  ;;  %v1758_v62 = vshll.u32 %v3861_v44, 16 }
  0xad   : > { %1033 = vrot.lane.b32.xlu1 %v2802_v41, %s3177_s20  ;;  %v3825_v41 = vcombine.low %v2701_v58, %v3812_v43  ;;  %v1158_v58 = vsel %vm573_vm1, %v1153_v12, %v1157_v7  ;;  %v1373_v34 = vsel %vm846_vm0, %v1371_v2, %v1372_v11  ;;  %v1375_v12 = vrot.slane %v3796_v63, 1  ;;  %v3881_v63 = vld [vmem:[%s3229_s19 + $0x50] ss:$0 sps:$4 sm:$0x11]  }
  0xae   : > { %1017 = vrot.lane.b32.xlu0 %v2794_v47, %s3177_s20  ;;  %v2685_v47 = vld [vmem:[%s3229_s19 + $0x48] sm:$0xf]  ;;  %v1397_v9 = vsel %vm846_vm0, %v1395_v26, %v1396_v20  ;;  %v1751_v20 = vshll.u32 %v3856_v40, 16  ;;  %v3889_v2 = vld [vmem:[%s3229_s19 + $0xbc] ss:$0 sps:$4 sm:$0x11]   ;;  %v1953_v11 = vsel %vm1951_vm3, %v3266_v23, %v3727_v36 }
  0xaf   : > { %v3821_v60 = vpop.permute.xlu1 %1425  ;;  %v1746_v42 = vshll.u32 %v3825_v41, 16  ;;  %v3853_v48 = vcombine.low %v2685_v47, %v3831_v39 }
  0xb0   : > { %v3827_v33 = vpop.permute.xlu0 %1409  ;;  %v1753_v1 = vrot.slane %v1751_v20, 1 }
  0xb1   : > { %1303 = vrot.lane.b32.xlu1 %v1242_v55, %s3180_s23  ;;  %v1398_v55 = vrot.slane %v2834_v17, 1  ;;  %v1650_v47 = vshll.u32 %v3853_v48, 16  ;;  %v1744_v17 = vshrl.u32 %v3825_v41, 16  ;;  %v1748_v26 = vrot.slane %v1746_v42, 1 }
  0xb2   : > { %1287 = vrot.lane.b32.xlu0 %v1146_v3, %s3180_s23  ;;  %v1374_v3 = vrot.slane %v2826_v35, 1  ;;  %v1969_v35 = vsel %vm1951_vm3, %v3261_v18, %v3748_v8  ;;  %v2737_v18 = vld [vmem:[%s3229_s19 + $0xa8] sm:$0xe]  ;;  %v3899_v8 = vld [vmem:[%s3229_s19 + $0x5c] ss:$0 sps:$4 sm:$0x11]  }
  0xb3   : > { %v3848_v15 = vpop.permute.xlu1 %1535  ;;  %v1400_v14 = vsel %vm846_vm0, %v1398_v55, %v1399_v4  ;;  %v1749_v49 = vor.u32 %v1748_v26, %v1744_v17  ;;  %v1648_v21 = vshrl.u32 %v3853_v48, 16  ;;  %v1652_v57 = vrot.slane %v1650_v47, 1 }
  0xb4   : > { %v3858_v53 = vpop.permute.xlu0 %1519  ;;  %v2002_v23 = vsel %vm1984_vm4, %v1969_v35, %v3684_v6  ;;  %v1756_v55 = vshrl.u32 %v3861_v44, 16  ;;  %v1760_v4 = vrot.slane %v1758_v62, 1  ;;  %v1660_v47 = vshrl.u32 %v3866_v56, 16 }
  0xb5   : > { %1305 = vrot.lane.b32.xlu1 %v1254_v25, %s3180_s23  ;;  %v1662_v25 = vshll.u32 %v3866_v56, 16  ;;  %v2881_v6 = vcombine.low %v2737_v18, %v3812_v43  ;;  %v1667_v20 = vshll.u32 %v3899_v8, 16  ;;  %v1754_v35 = vsel %vm573_vm1, %v1749_v49, %v1753_v1 }
  0xb6   : > { %1289 = vrot.lane.b32.xlu0 %v1158_v58, %s3180_s23  ;;  %v1376_v58 = vsel %vm846_vm0, %v1374_v3, %v1375_v12  ;;  %v1986_v3 = vsel %vm1984_vm4, %v1953_v11, %v3695_v22  ;;  %v1763_v12 = vshll.u32 %v3889_v2, 16  ;;  %v2035_v22 = vsel %vm2017_vm5, %v2002_v23, %v3654_v5  ;;  %v273_v11 = vld [vmem:[%s3229_s19 + $0xa8] sm:$0xf]  ;;  %v3933_v23 = vld [vmem:[%s3229_s19 + $0x4c] sm:$0xf] }
  0xb7   : > { %v3872_v7 = vpop.permute.xlu1 %1537  ;;  %v1664_v17 = vrot.slane %v1662_v25, 1  ;;  %v1653_v25 = vor.u32 %v1652_v57, %v1648_v21  ;;  %v2068_v43 = vsel %vm2050_vm6, %v2035_v22, %v3780_v45  ;;  %v257_v5 = vld [vmem:[%s3229_s19 + $0x48] sm:$0xf]  ;;  %v275_v22 = vld [vmem:[%s3229_s19 + $0xb4] sm:$0xf] }
  0xb8   : > { %v3877_v61 = vpop.permute.xlu0 %1521  ;;  %v2101_v57 = vsel %vm2083_vm7, %v2068_v43, %v3805_v30  ;;  %v1765_v21 = vrot.slane %v1763_v12, 1  ;;  %v1971_v30 = vsel %vm1951_vm3, %v3273_v31, %v3739_v16  ;;  %v1907_v31 = vrot.slane %v2881_v6, 1  ;;  %v3965_v16 = vld [vmem:[%s3229_s19 + $0xb0] ss:$0 sps:$4 sm:$0x11]  }
  0xb9   : > { %1431 = vrot.lane.b32.xlu1 %v1397_v9, %s3181_s24  ;;  %v2729_v9 = vld [vmem:[%s3229_s19 + $0x48] sm:$0xe]  ;;  %v1665_v49 = vor.u32 %v1664_v17, %v1660_v47  ;;  %v2134_v45 = vsel %vm2116_vm8, %v2101_v57, %v3848_v15  ;;  %v3957_v15 = vcombine.low %v257_v5, %v3933_v23  ;;  %v2004_v47 = vsel %vm1984_vm4, %v1971_v30, %v3703_v24 }
  0xba   : > { %1415 = vrot.lane.b32.xlu0 %v1373_v34, %s3181_s24  ;;  %v1655_v34 = vshll.u32 %v3881_v63, 16  ;;  %v2873_v26 = vcombine.low %v2729_v9, %v3831_v39  ;;  %v2019_v39 = vsel %vm2017_vm5, %v1986_v3, %v3668_v50  ;;  %v1761_v9 = vor.u32 %v1760_v4, %v1756_v55 }
  0xbb   : > { %v1808_v42 = vpop.permute.xlu1 %1807  ;;  %v2052_v1 = vsel %vm2050_vm6, %v2019_v39, %v3784_v46  ;;  %v1884_v17 = vrot.slane %v3881_v63, 1  ;;  %v750_v43 = vshll.u32 %v3965_v16, 16  ;;  %v259_v39 = vld [vmem:[%s3229_s19 + $0x54] sm:$0xf] }
  0xbc   : > { %v1792_v36 = vpop.permute.xlu0 %1791  ;;  %v1657_v18 = vrot.slane %v1655_v34, 1  ;;  %v2085_v50 = vsel %vm2083_vm7, %v2052_v1, %v3808_v19  ;;  %v1669_v34 = vrot.slane %v1667_v20, 1  ;;  %v2167_v19 = vsel %vm2149_vm9, %v2134_v45, %v1808_v42 }
  0xbd   : > { %1433 = vrot.lane.b32.xlu1 %v1400_v14, %s3181_s24  ;;  %v3923_v14 = vld [vmem:[%s3229_s19 + $0xac] sm:$0xf]  ;;  %v649_v20 = vshll.u32 %v3957_v15, 16 }
  0xbe   : > { %1417 = vrot.lane.b32.xlu0 %v1376_v58, %s3181_s24  ;;  %v3948_v46 = vcombine.low %v273_v11, %v3923_v14  ;;  %v1658_v42 = vsel %vm573_vm1, %v1653_v25, %v1657_v18  ;;  %v3994_v25 = vld [vmem:[%s3229_s19 + $0xb8] sm:$0xf] }
  0xbf   : > { %v3918_v62 = vpop.permute.xlu1 %1809  ;;  %v4006_v18 = vld [vmem:[%s3229_s19 + $0x58] sm:$0xf] }
  0xc0   : > { %v3929_v58 = vpop.permute.xlu0 %1793  ;;  %v745_v6 = vshll.u32 %v3948_v46, 16 }
  0xc1   : > { %1543 = vrot.lane.b32.xlu1 %v3825_v41, %s3182_s27  ;;  %v2118_v41 = vsel %vm2116_vm8, %v2085_v50, %v3858_v53  ;;  %v4023_v50 = vcombine.low %v275_v22, %v3994_v25 }
  0xc2   : > { %1527 = vrot.lane.b32.xlu0 %v3853_v48, %s3182_s27  ;;  %v1955_v48 = vsel %vm1951_vm3, %v3279_v38, %v3722_v52  ;;  %v2151_v4 = vsel %vm2149_vm9, %v2118_v41, %v1792_v36  ;;  %v1908_v38 = vrot.slane %v3856_v40, 1  ;;  %v1883_v52 = vrot.slane %v2873_v26, 1  ;;  %v3974_v36 = vld [vmem:[%s3229_s19 + $0x50] ss:$0 sps:$4 sm:$0x11]  }
  0xc3   : > { %v1936_v55 = vpop.permute.xlu1 %1935  ;;  %v2037_v40 = vsel %vm2017_vm5, %v2004_v47, %v3760_v29  ;;  %v1988_v26 = vsel %vm1984_vm4, %v1955_v48, %v3715_v59  ;;  %v743_v59 = vshrl.u32 %v3948_v46, 16  ;;  %v752_v48 = vrot.slane %v750_v43, 1  ;;  %v299_v43 = vld [vmem:[%s3229_s19 + $0x48] sm:$0xe] }
  0xc4   : > { %v1920_v3 = vpop.permute.xlu0 %1919  ;;  %v2200_v12 = vsel %vm2182_vm10, %v2167_v19, %v1936_v55  ;;  %v2021_v63 = vsel %vm2017_vm5, %v1988_v26, %v3764_v37  ;;  %v2070_v29 = vsel %vm2050_vm6, %v2037_v40, %v3792_v0  ;;  %v647_v37 = vshrl.u32 %v3957_v15, 16 }
  0xc5   : > { %1545 = vrot.lane.b32.xlu1 %v3861_v44, %s3182_s27  ;;  %v2184_v53 = vsel %vm2182_vm10, %v2151_v4, %v1920_v3  ;;  %2949 = vmatprep.mubr.msk.bf16.mxu1 %vm2242_vm11, %v2200_v12  ;;  %v1766_v44 = vsel %vm573_vm1, %v1761_v9, %v1765_v21  ;;  %v2054_v9 = vsel %vm2050_vm6, %v2021_v63, %v3798_v13  ;;  %v654_v0 = vshll.u32 %v3974_v36, 16  ;;  %v2738_v21 = vld [vmem:[%s3229_s19 + $0xb4] sm:$0xe]  ;;  %v4044_v4 = vld [vmem:[%s3229_s19 + $0xbc] ss:$0 sps:$4 sm:$0x11]  }
  0xc6   : > { %1529 = vrot.lane.b32.xlu0 %v3866_v56, %s3182_s27  ;;  %2933 = vmatprep.mubr.msk.bf16.mxu0 %vm2242_vm11, %v2184_v53  ;;  %v1670_v56 = vsel %vm573_vm1, %v1665_v49, %v1669_v34  ;;  %v2103_v5 = vsel %vm2083_vm7, %v2070_v29, %v3821_v60  ;;  %v2087_v1 = vsel %vm2083_vm7, %v2054_v9, %v3827_v33  ;;  %v2730_v49 = vld [vmem:[%s3229_s19 + $0x54] sm:$0xe]  ;;  %v747_v13 = vrot.slane %v745_v6, 1 }
  0xc7   : > { %v3988_v24 = vpop.permute.xlu1 %786  ;;  %v2136_v57 = vsel %vm2116_vm8, %v2103_v5, %v3872_v7  ;;  %v2120_v60 = vsel %vm2116_vm8, %v2087_v1, %v3877_v61  ;;  %v651_v33 = vrot.slane %v649_v20, 1  ;;  %v4030_v34 = vcombine.low %v259_v39, %v4006_v18 }
  0xc8   : > { %v4000_v11 = vpop.permute.xlu0 %770  ;;  %v2153_v7 = vsel %vm2149_vm9, %v2120_v60, %v3929_v58  ;;  %v2882_v19 = vcombine.low %v2738_v21, %v3838_v10  ;;  %v2874_v61 = vcombine.low %v2730_v49, %v3846_v27  ;;  %v748_v58 = vor.u32 %v747_v13, %v743_v59  ;;  %v308_v13 = vld [vmem:[%s3229_s19 + $0xb4] sm:$0xe] }
  0xc9   : > { %1815 = vrot.lane.b32.xlu1 %v1754_v35, %s3183_s30  ;;  %v2169_v35 = vsel %vm2149_vm9, %v2136_v57, %v3918_v62  ;;  %v1909_v62 = vsel %vm846_vm0, %v1907_v31, %v1908_v38  ;;  %v757_v10 = vshll.u32 %v4023_v50, 16  ;;  %v1885_v27 = vsel %vm846_vm0, %v1883_v52, %v1884_v17 }
  0xca   : > { %1799 = vrot.lane.b32.xlu0 %v1658_v42, %s3183_s30  ;;  %v652_v12 = vor.u32 %v651_v33, %v647_v37  ;;  %v656_v53 = vrot.slane %v654_v0, 1  ;;  %v4051_v42 = vld [vmem:[%s3229_s19 + $0x5c] ss:$0 sps:$4 sm:$0x11]   ;;  %v661_v47 = vshll.u32 %v4030_v34, 16  ;;  %v1910_v31 = vrot.slane %v2882_v19, 1 }
  0xcb   : > { %v1938_v45 = vpop.permute.xlu1 %1937  ;;  %v1911_v38 = vrot.slane %v3889_v2, 1  ;;  %v1886_v6 = vrot.slane %v2874_v61, 1  ;;  %v1887_v40 = vrot.slane %v3899_v8, 1  ;;  %v753_v52 = vsel %vm573_vm1, %v748_v58, %v752_v48  ;;  %v307_v8 = vld [vmem:[%s3229_s19 + $0xa8] sm:$0xe] }
  0xcc   : > { %v2202_v30 = vsel %vm2182_vm10, %v2169_v35, %v1938_v45  ;;  %v1922_v41 = vpop.permute.xlu0 %1921  ;;  %v755_v17 = vshrl.u32 %v4023_v50, 16  ;;  %v759_v26 = vrot.slane %v757_v10, 1  ;;  %v657_v22 = vsel %vm573_vm1, %v652_v12, %v656_v53  ;;  %v300_v35 = vld [vmem:[%s3229_s19 + $0x54] sm:$0xe] }
  0xcd   : > { %v2186_v55 = vsel %vm2182_vm10, %v2153_v7, %v1922_v41  ;;  %1817 = vrot.lane.b32.xlu1 %v1766_v44, %s3183_s30  ;;  %2950 = vmatmul.mubr.msk.bf16.vlgmr.msra.gmra.mrb[0].mxu1 %vm2242_vm11, %v2202_v30  ;;  %v659_v63 = vshrl.u32 %v4030_v34, 16  ;;  %v663_v29 = vrot.slane %v661_v47, 1  ;;  %v666_v2 = vshll.u32 %v4051_v42, 16  ;;  %v2625_v48 = vld [vmem:[%s3229_s19 + $0x54] sm:$0xf] }
  0xce   : > { %1801 = vrot.lane.b32.xlu0 %v1670_v56, %s3183_s30  ;;  %2934 = vmatmul.mubr.msk.bf16.vlgmr.msra.gmra.mrb[0].mxu0 %vm2242_vm11, %v2186_v55  ;;  %v762_v56 = vshll.u32 %v4044_v4, 16  ;;  %v1912_v39 = vsel %vm846_vm0, %v1910_v31, %v1911_v38  ;;  %v760_v9 = vor.u32 %v759_v26, %v755_v17  ;;  %v2787_v37 = vcombine.low %v307_v8, %v3923_v14  ;;  %v2641_v55 = vld [vmem:[%s3229_s19 + $0xb4] sm:$0xf]  ;;  %v2643_v38 = vld [vmem:[%s3229_s19 + $0xc0] sm:$0xf] }
  0xcf   : > { %v4047_v3 = vpop.permute.xlu1 %788  ;;  %v1888_v1 = vsel %vm846_vm0, %v1886_v6, %v1887_v40  ;;  %v664_v57 = vor.u32 %v663_v29, %v659_v63  ;;  %v668_v21 = vrot.slane %v666_v2, 1  ;;  %v2779_v49 = vcombine.low %v299_v43, %v3933_v23  ;;  %v4116_v6 = vld [vmem:[%s3229_s19 + $0xc4] sm:$0xf] }
  0xd0   : > { %v4054_v44 = vpop.permute.xlu0 %772  ;;  %v764_v5 = vrot.slane %v762_v56, 1  ;;  %v889_v45 = vrot.slane %v2787_v37, 1  ;;  %v890_v33 = vrot.slane %v3965_v16, 1  ;;  %v2788_v7 = vcombine.low %v308_v13, %v3994_v25  ;;  %v4102_v16 = vld [vmem:[%s3229_s19 + $0x58] sm:$0xf] }
  0xd1   : > { %1943 = vrot.lane.b32.xlu1 %v1909_v62, %s3184_s4  ;;  %v669_v23 = vsel %vm573_vm1, %v664_v57, %v668_v21  ;;  %v865_v41 = vrot.slane %v2779_v49, 1  ;;  %v866_v19 = vrot.slane %v3974_v36, 1  ;;  %v2780_v61 = vcombine.low %v300_v35, %v4006_v18  ;;  %v4096_v62 = vld [vmem:[%s3229_s19 + $0xb8] sm:$0xf]  ;;  %v4122_v17 = vld [vmem:[%s3229_s19 + $0x64] sm:$0xf] }
  0xd2   : > { %1927 = vrot.lane.b32.xlu0 %v1885_v27, %s3184_s4  ;;  %v765_v14 = vsel %vm573_vm1, %v760_v9, %v764_v5  ;;  %v891_v36 = vsel %vm846_vm0, %v889_v45, %v890_v33  ;;  %v892_v25 = vrot.slane %v2788_v7, 1  ;;  %v893_v18 = vrot.slane %v4044_v4, 1  ;;  %v4126_v4 = vld [vmem:[%s3229_s19 + $0xbc] ss:$0 sps:$4 sm:$0x11]  }
  0xd3   : > { %v4063_v20 = vpop.permute.xlu1 %915  ;;  %v2803_v10 = vcombine.low %v2641_v55, %v4096_v62  ;;  %v867_v12 = vsel %vm846_vm0, %v865_v41, %v866_v19  ;;  %v868_v53 = vrot.slane %v2780_v61, 1  ;;  %v869_v47 = vrot.slane %v4051_v42, 1  ;;  %v4150_v35 = vld [vmem:[%s3229_s19 + $0x68] ss:$0 sps:$4 sm:$0x11]  }
  0xd4   : > { %v4069_v59 = vpop.permute.xlu0 %899  ;;  %v2795_v31 = vcombine.low %v2625_v48, %v4102_v16  ;;  %v894_v26 = vsel %vm846_vm0, %v892_v25, %v893_v18  ;;  %v2804_v42 = vcombine.low %v2643_v38, %v4116_v6  ;;  %v1263_v9 = vshll.u32 %v4126_v4, 16 }
  0xd5   : > { %794 = vrot.lane.b32.xlu1 %v753_v52, %s3179_s22  ;;  %v2627_v52 = vld [vmem:[%s3229_s19 + $0x60] sm:$0xf]  ;;  %v1258_v56 = vshll.u32 %v2803_v10, 16  ;;  %v870_v29 = vsel %vm846_vm0, %v868_v53, %v869_v47  ;;  %v1179_v18 = vshll.u32 %v4150_v35, 16  ;;  %v2667_v53 = vld [vmem:[%s3229_s19 + $0x54] sm:$0xe] }
  0xd6   : > { %778 = vrot.lane.b32.xlu0 %v657_v22, %s3179_s22  ;;  %v4132_v22 = vld [vmem:[%s3229_s19 + $0x5c] ss:$0 sps:$4 sm:$0x11]   ;;  %v2796_v2 = vcombine.low %v2627_v52, %v4122_v17  ;;  %v1162_v8 = vshll.u32 %v2795_v31, 16  ;;  %v1270_v57 = vshll.u32 %v2804_v42, 16  ;;  %v1160_v49 = vshrl.u32 %v2795_v31, 16 }
  0xd7   : > { %v4076_v0 = vpop.permute.xlu1 %917  ;;  %v1260_v5 = vrot.slane %v1258_v56, 1  ;;  %v1167_v37 = vshll.u32 %v4132_v22, 16  ;;  %v1265_v33 = vrot.slane %v1263_v9, 1  ;;  %v1268_v7 = vshrl.u32 %v2804_v42, 16  ;;  %v2676_v9 = vld [vmem:[%s3229_s19 + $0xc0] sm:$0xe] }
  0xd8   : > { %v4081_v60 = vpop.permute.xlu0 %901  ;;  %v1164_v13 = vrot.slane %v1162_v8, 1  ;;  %v1272_v19 = vrot.slane %v1270_v57, 1  ;;  %v1181_v8 = vrot.slane %v1179_v18, 1 }
  0xd9   : > { %1945 = vrot.lane.b32.xlu1 %v1912_v39, %s3184_s4  ;;  %v1256_v39 = vshrl.u32 %v2803_v10, 16  ;;  %v1169_v41 = vrot.slane %v1167_v37, 1  ;;  %v4178_v37 = vld [vmem:[%s3229_s19 + $0xc4] sm:$0xf] }
  0xda   : > { %1929 = vrot.lane.b32.xlu0 %v1888_v1, %s3184_s4  ;;  %v4145_v1 = vld [vmem:[%s3229_s19 + $0xc8] ss:$0 sps:$4 sm:$0x11]   ;;  %v1165_v48 = vor.u32 %v1164_v13, %v1160_v49  ;;  %v2836_v13 = vcombine.low %v2676_v9, %v4116_v6 }
  0xdb   : > { %v4089_v30 = vpop.permute.xlu1 %1027  ;;  %v1275_v61 = vshll.u32 %v4145_v1, 16  ;;  %v1405_v18 = vrot.slane %v4145_v1, 1 }
  0xdc   : > { %v4098_v58 = vpop.permute.xlu0 %1011  ;;  %v1170_v56 = vsel %vm573_vm1, %v1165_v48, %v1169_v41  ;;  %v2707_v48 = vld [vmem:[%s3229_s19 + $0xcc] sm:$0xf] }
  0xdd   : > { %796 = vrot.lane.b32.xlu1 %v765_v14, %s3179_s22  ;;  %v1174_v14 = vshll.u32 %v2796_v2, 16  ;;  %v1277_v38 = vrot.slane %v1275_v61, 1 }
  0xde   : > { %780 = vrot.lane.b32.xlu0 %v669_v23, %s3179_s22  ;;  %v1261_v23 = vor.u32 %v1260_v5, %v1256_v39  ;;  %v2827_v39 = vcombine.low %v2667_v53, %v4102_v16  ;;  %v2705_v5 = vld [vmem:[%s3229_s19 + $0xc0] sm:$0xf]  ;;  %v1378_v16 = vrot.slane %v4132_v22, 1  ;;  %v4201_v22 = vld [vmem:[%s3229_s19 + $0xd0] sm:$0xf] }
  0xdf   : > { %v4109_v27 = vpop.permute.xlu1 %1029  ;;  %v1176_v25 = vrot.slane %v1174_v14, 1  ;;  %v2689_v14 = vld [vmem:[%s3229_s19 + $0x60] sm:$0xf] }
  0xe0   : > { %v4118_v40 = vpop.permute.xlu0 %1013  ;;  %v1266_v47 = vsel %vm573_vm1, %v1261_v23, %v1265_v33  ;;  %v4188_v33 = vld [vmem:[%s3229_s19 + $0x64] sm:$0xf]  ;;  %v1377_v41 = vrot.slane %v2827_v39, 1  ;;  %v4223_v39 = vld [vmem:[%s3229_s19 + $0x68] ss:$0 sps:$4 sm:$0x11]  }
  0xe1   : > { %923 = vrot.lane.b32.xlu1 %v891_v36, %s3178_s21  ;;  %v1172_v36 = vshrl.u32 %v2796_v2, 16  ;;  %v2843_v6 = vcombine.low %v2689_v14, %v4188_v33  ;;  %v1679_v14 = vshll.u32 %v4223_v39, 16 }
  0xe2   : > { %907 = vrot.lane.b32.xlu0 %v867_v12, %s3178_s21  ;;  %v2675_v12 = vld [vmem:[%s3229_s19 + $0xb4] sm:$0xe]  ;;  %v1379_v53 = vsel %vm846_vm0, %v1377_v41, %v1378_v16  ;;  %v1973_v41 = vsel %vm1951_vm3, %v3417_v51, %v3988_v24 }
  0xe3   : > { %v4134_v63 = vpop.permute.xlu1 %1299  ;;  %v2835_v52 = vcombine.low %v2675_v12, %v4096_v62  ;;  %v1402_v62 = vrot.slane %v4126_v4, 1  ;;  %v1674_v9 = vshll.u32 %v2843_v6, 16 }
  0xe4   : > { %v4138_v43 = vpop.permute.xlu0 %1283 }
  0xe5   : > { %925 = vrot.lane.b32.xlu1 %v894_v26, %s3178_s21  ;;  %v1401_v49 = vrot.slane %v2835_v52, 1 }
  0xe6   : > { %909 = vrot.lane.b32.xlu0 %v870_v29, %s3178_s21  ;;  %v1177_v29 = vor.u32 %v1176_v25, %v1172_v36  ;;  %v4204_v36 = vld [vmem:[%s3229_s19 + $0xc8] ss:$0 sps:$4 sm:$0x11]   ;;  %v1404_v25 = vrot.slane %v2836_v13, 1 }
  0xe7   : > { %v4147_v21 = vpop.permute.xlu1 %1301  ;;  %v1775_v1 = vshll.u32 %v4204_v36, 16 }
  0xe8   : > { %v4152_v45 = vpop.permute.xlu0 %1285  ;;  %v1182_v23 = vsel %vm573_vm1, %v1177_v29, %v1181_v8  ;;  %v4217_v29 = vcombine.low %v2707_v48, %v4201_v22  ;;  %v4220_v8 = vld [vmem:[%s3229_s19 + $0x70] sm:$0xf]  ;;  %v1672_v48 = vshrl.u32 %v2843_v6, 16 }
  0xe9   : > { %1035 = vrot.lane.b32.xlu1 %v2803_v10, %s3177_s20 }
  0xea   : > { %1019 = vrot.lane.b32.xlu0 %v2795_v31, %s3177_s20  ;;  %v1273_v31 = vor.u32 %v1272_v19, %v1268_v7  ;;  %v2851_v19 = vcombine.low %v2705_v5, %v4178_v37 }
  0xeb   : > { %v4157_v55 = vpop.permute.xlu1 %1427 }
  0xec   : > { %v4161_v10 = vpop.permute.xlu0 %1411  ;;  %v1278_v57 = vsel %vm573_vm1, %v1273_v31, %v1277_v38  ;;  %v1381_v31 = vrot.slane %v4150_v35, 1  ;;  %v2691_v38 = vld [vmem:[%s3229_s19 + $0x6c] sm:$0xf]  ;;  %v1770_v52 = vshll.u32 %v2851_v19, 16  ;;  %v1406_v35 = vsel %vm846_vm0, %v1404_v25, %v1405_v18 }
  0xed   : > { %1037 = vrot.lane.b32.xlu1 %v2804_v42, %s3177_s20  ;;  %v1957_v25 = vsel %vm1951_vm3, %v3420_v54, %v4000_v11  ;;  %v2006_v18 = vsel %vm1984_vm4, %v1973_v41, %v4063_v20 }
  0xee   : > { %1021 = vrot.lane.b32.xlu0 %v2796_v2, %s3177_s20  ;;  %v2668_v2 = vld [vmem:[%s3229_s19 + $0x60] sm:$0xe]  ;;  %v1772_v16 = vrot.slane %v1770_v52, 1  ;;  %v1990_v51 = vsel %vm1984_vm4, %v1957_v25, %v4069_v59  ;;  %v2039_v24 = vsel %vm2017_vm5, %v2006_v18, %v4089_v30 }
  0xef   : > { %v4168_v26 = vpop.permute.xlu1 %1429  ;;  %v2828_v4 = vcombine.low %v2668_v2, %v4122_v17  ;;  %v1403_v17 = vsel %vm846_vm0, %v1401_v49, %v1402_v62  ;;  %v4230_v2 = vld [vmem:[%s3229_s19 + $0xd4] ss:$0 sps:$4 sm:$0x11]   ;;  %v1768_v49 = vshrl.u32 %v2851_v19, 16  ;;  %v2023_v20 = vsel %vm2017_vm5, %v1990_v51, %v4098_v58  ;;  %v2739_v58 = vld [vmem:[%s3229_s19 + $0xc0] sm:$0xe] }
  0xf0   : > { %v4173_v42 = vpop.permute.xlu0 %1413  ;;  %v2072_v52 = vsel %vm2050_vm6, %v2039_v24, %v4134_v63  ;;  %v2056_v59 = vsel %vm2050_vm6, %v2023_v20, %v4138_v43  ;;  %v2732_v24 = vld [vmem:[%s3229_s19 + $0x6c] sm:$0xe] }
  0xf1   : > { %1307 = vrot.lane.b32.xlu1 %v1266_v47, %s3180_s23  ;;  %v1380_v47 = vrot.slane %v2828_v4, 1  ;;  %v1777_v4 = vrot.slane %v1775_v1, 1  ;;  %v1773_v54 = vor.u32 %v1772_v16, %v1768_v49  ;;  %v2105_v30 = vsel %vm2083_vm7, %v2072_v52, %v4157_v55 }
  0xf2   : > { %1291 = vrot.lane.b32.xlu0 %v1170_v56, %s3180_s23  ;;  %v2089_v63 = vsel %vm2083_vm7, %v2056_v59, %v4161_v10 }
  0xf3   : > { %v4190_v7 = vpop.permute.xlu1 %1539  ;;  %v1382_v62 = vsel %vm846_vm0, %v1380_v47, %v1381_v31  ;;  %v1787_v47 = vshll.u32 %v4230_v2, 16  ;;  %v4251_v31 = vld [vmem:[%s3229_s19 + $0x74] ss:$0 sps:$4 sm:$0x11]   ;;  %v1778_v41 = vsel %vm573_vm1, %v1773_v54, %v1777_v4  ;;  %v1959_v4 = vsel %vm1951_vm3, %v3463_v32, %v4054_v44 }
  0xf4   : > { %v4195_v61 = vpop.permute.xlu0 %1523  ;;  %v2138_v16 = vsel %vm2116_vm8, %v2105_v30, %v4190_v7  ;;  %v1691_v43 = vshll.u32 %v4251_v31, 16 }
  0xf5   : > { %1309 = vrot.lane.b32.xlu1 %v1278_v57, %s3180_s23  ;;  %v4234_v57 = vcombine.low %v2691_v38, %v4220_v8  ;;  %v2122_v55 = vsel %vm2116_vm8, %v2089_v63, %v4195_v61  ;;  %v1975_v61 = vsel %vm1951_vm3, %v3458_v28, %v4047_v3  ;;  %v1992_v3 = vsel %vm1984_vm4, %v1959_v4, %v4081_v60 }
  0xf6   : > { %1293 = vrot.lane.b32.xlu0 %v1182_v23, %s3180_s23  ;;  %v1782_v23 = vshll.u32 %v4217_v29, 16  ;;  %v1693_v44 = vrot.slane %v1691_v43, 1  ;;  %v1914_v60 = vrot.slane %v4204_v36, 1 }
  0xf7   : > { %v4209_v12 = vpop.permute.xlu1 %1541  ;;  %v1686_v11 = vshll.u32 %v4234_v57, 16  ;;  %v1684_v49 = vshrl.u32 %v4234_v57, 16 }
  0xf8   : > { %v4214_v56 = vpop.permute.xlu0 %1525 }
  0xf9   : > { %1435 = vrot.lane.b32.xlu1 %v1403_v17, %s3181_s24  ;;  %v1676_v17 = vrot.slane %v1674_v9, 1  ;;  %v1681_v9 = vrot.slane %v1679_v14, 1  ;;  %v1789_v14 = vrot.slane %v1787_v47, 1  ;;  %v2740_v47 = vld [vmem:[%s3229_s19 + $0xcc] sm:$0xe] }
  0xfa   : > { %1419 = vrot.lane.b32.xlu0 %v1379_v53, %s3181_s24  ;;  %v1780_v53 = vshrl.u32 %v4217_v29, 16  ;;  %v2884_v52 = vcombine.low %v2740_v47, %v4201_v22 }
  0xfb   : > { %v1812_v5 = vpop.permute.xlu1 %1811 }
  0xfc   : > { %v1796_v13 = vpop.permute.xlu0 %1795 }
  0xfd   : > { %1437 = vrot.lane.b32.xlu1 %v1406_v35, %s3181_s24  ;;  %v1784_v35 = vrot.slane %v1782_v23, 1  ;;  %v2155_v10 = vsel %vm2149_vm9, %v2122_v55, %v1796_v13 }
  0xfe   : > { %1421 = vrot.lane.b32.xlu0 %v1382_v62, %s3181_s24  ;;  %v1677_v62 = vor.u32 %v1676_v17, %v1672_v48  ;;  %v1688_v48 = vrot.slane %v1686_v11, 1  ;;  %v2731_v17 = vld [vmem:[%s3229_s19 + $0x60] sm:$0xe] }
  0xff   : > { %v4257_v38 = vpop.permute.xlu1 %1813  ;;  %v1785_v18 = vor.u32 %v1784_v35, %v1780_v53  ;;  %v2875_v28 = vcombine.low %v2731_v17, %v4188_v33  ;;  %v2876_v35 = vcombine.low %v2732_v24, %v4220_v8  ;;  %v1917_v8 = vrot.slane %v4230_v2, 1 }
 0x100   : > { %v4264_v1 = vpop.permute.xlu0 %1797  ;;  %v1682_v13 = vsel %vm573_vm1, %v1677_v62, %v1681_v9  ;;  %v1689_v32 = vor.u32 %v1688_v48, %v1684_v49  ;;  %v1893_v49 = vrot.slane %v4251_v31, 1 }
 0x101   : > { %1547 = vrot.lane.b32.xlu1 %v2851_v19, %s3182_s27  ;;  %v2171_v19 = vsel %vm2149_vm9, %v2138_v16, %v1812_v5  ;;  %v1790_v33 = vsel %vm573_vm1, %v1785_v18, %v1789_v14  ;;  %v1889_v36 = vrot.slane %v2875_v28, 1  ;;  %v1892_v62 = vrot.slane %v2876_v35, 1 }
 0x102   : > { %1531 = vrot.lane.b32.xlu0 %v2843_v6, %s3182_s27  ;;  %v2883_v6 = vcombine.low %v2739_v58, %v4178_v37  ;;  %v2008_v37 = vsel %vm1984_vm4, %v1975_v61, %v4076_v0  ;;  %v2025_v0 = vsel %vm2017_vm5, %v1992_v3, %v4118_v40  ;;  %v1890_v40 = vrot.slane %v4223_v39, 1 }
 0x103   : > { %v1940_v23 = vpop.permute.xlu1 %1939  ;;  %v1694_v39 = vsel %vm573_vm1, %v1689_v32, %v1693_v44  ;;  %v1894_v14 = vsel %vm846_vm0, %v1892_v62, %v1893_v49  ;;  %v4567_v44 = vld [vmem:[#allocation3_spill] sm:$0xff] }
 0x104   : > { %v2204_v25 = vsel %vm2182_vm10, %v2171_v19, %v1940_v23  ;;  %v1924_v7 = vpop.permute.xlu0 %1923  ;;  %v1913_v11 = vrot.slane %v2883_v6, 1 }
 0x105   : > { %v2188_v5 = vsel %vm2182_vm10, %v2155_v10, %v1924_v7  ;;  %1549 = vrot.lane.b32.xlu1 %v4217_v29, %s3182_s27  ;;  %2953 = vmatprep.mubr.msk.bf16.mxu1 %vm2242_vm11, %v2204_v25  ;;  %v2041_v29 = vsel %vm2017_vm5, %v2008_v37, %v4109_v27  ;;  %v2058_v27 = vsel %vm2050_vm6, %v2025_v0, %v4152_v45 }
 0x106   : > { %1533 = vrot.lane.b32.xlu0 %v4234_v57, %s3182_s27  ;;  %2937 = vmatprep.mubr.msk.bf16.mxu0 %vm2242_vm11, %v2188_v5  ;;  %v2074_v57 = vsel %vm2050_vm6, %v2041_v29, %v4147_v21  ;;  %v2091_v21 = vsel %vm2083_vm7, %v2058_v27, %v4173_v42  ;;  %v1915_v22 = vsel %vm846_vm0, %v1913_v11, %v1914_v60  ;;  %v4566_v29 = vld [vmem:[#allocation2_spill] sm:$0xff] }
 0x107   : > { %v4308_v53 = vpop.permute.xlu1 %790  ;;  %v2107_v54 = vsel %vm2083_vm7, %v2074_v57, %v4168_v26  ;;  %v2124_v45 = vsel %vm2116_vm8, %v2091_v21, %v4214_v56  ;;  %v1916_v56 = vrot.slane %v2884_v52, 1 }
 0x108   : > { %v4315_v51 = vpop.permute.xlu0 %774  ;;  %v2140_v20 = vsel %vm2116_vm8, %v2107_v54, %v4209_v12  ;;  %v2157_v42 = vsel %vm2149_vm9, %v2124_v45, %v4264_v1  ;;  %v1891_v1 = vsel %vm846_vm0, %v1889_v36, %v1890_v40  ;;  %v1977_v32 = vsel %vm1951_vm3, %v4566_v29, %v4308_v53 }
 0x109   : > { %1819 = vrot.lane.b32.xlu1 %v1778_v41, %s3183_s30  ;;  %v2173_v26 = vsel %vm2149_vm9, %v2140_v20, %v4257_v38  ;;  %v1918_v63 = vsel %vm846_vm0, %v1916_v56, %v1917_v8  ;;  %v1961_v47 = vsel %vm1951_vm3, %v4567_v44, %v4315_v51 }
 0x10a   : > { %1803 = vrot.lane.b32.xlu0 %v1682_v13, %s3183_s30 }
 0x10b   : > { %v1942_v9 = vpop.permute.xlu1 %1941 }
 0x10c   : > { %v2206_v12 = vsel %vm2182_vm10, %v2173_v26, %v1942_v9  ;;  %v1926_v59 = vpop.permute.xlu0 %1925  ;;  %v4568_v9 = vld [vmem:[#allocation4_spill] sm:$0xff] }
 0x10d   : > { %v2190_v30 = vsel %vm2182_vm10, %v2157_v42, %v1926_v59  ;;  %1821 = vrot.lane.b32.xlu1 %v1790_v33, %s3183_s30  ;;  %2954 = vmatmul.mubr.msk.bf16.gmra.mrb[4].mxu1 %vm2242_vm11, %v2206_v12  ;;  %v4569_v42 = vld [vmem:[#allocation5_spill] sm:$0xff] }
 0x10e   : > { %1805 = vrot.lane.b32.xlu0 %v1694_v39, %s3183_s30  ;;  %2938 = vmatmul.mubr.msk.bf16.gmra.mrb[4].mxu0 %vm2242_vm11, %v2190_v30 }
 0x10f   : > { %v793_v38 = vpop.permute.xlu1 %792 }
 0x110   : > { %v777_v58 = vpop.permute.xlu0 %776  ;;  %v1979_v39 = vsel %vm1951_vm3, %v4568_v9, %v793_v38 }
 0x111   : > { %1947 = vrot.lane.b32.xlu1 %v1915_v22, %s3184_s4  ;;  %v1963_v12 = vsel %vm1951_vm3, %v4569_v42, %v777_v58 }
 0x112   : > { %1931 = vrot.lane.b32.xlu0 %v1891_v1, %s3184_s4 }
 0x113   : > { %v920_v16 = vpop.permute.xlu1 %919 }
 0x114   : > { %v904_v43 = vpop.permute.xlu0 %903  ;;  %v2010_v0 = vsel %vm1984_vm4, %v1977_v32, %v920_v16 }
 0x115   : > { %1949 = vrot.lane.b32.xlu1 %v1918_v63, %s3184_s4  ;;  %v1994_v57 = vsel %vm1984_vm4, %v1961_v47, %v904_v43 }
 0x116   : > { %1933 = vrot.lane.b32.xlu0 %v1894_v14, %s3184_s4 }
 0x117   : > { %v922_v2 = vpop.permute.xlu1 %921 }
 0x118   : > { %v906_v55 = vpop.permute.xlu0 %905  ;;  %v2012_v59 = vsel %vm1984_vm4, %v1979_v39, %v922_v2 }
 0x119   : > { %v1996_v30 = vsel %vm1984_vm4, %v1963_v12, %v906_v55 }
 0x11b   : > { %v1032_v19 = vpop.permute.xlu1 %1031 }
 0x11c   : > { %v1016_v23 = vpop.permute.xlu0 %1015  ;;  %v2043_v33 = vsel %vm2017_vm5, %v2010_v0, %v1032_v19 }
 0x11d   : > { %v2027_v24 = vsel %vm2017_vm5, %v1994_v57, %v1016_v23 }
 0x11f   : > { %v1034_v31 = vpop.permute.xlu1 %1033 }
 0x120   : > { %v1018_v41 = vpop.permute.xlu0 %1017  ;;  %v2045_v22 = vsel %vm2017_vm5, %v2012_v59, %v1034_v31 }
 0x121   : > { %v2029_v8 = vsel %vm2017_vm5, %v1996_v30, %v1018_v41 }
 0x123   : > { %v1304_v48 = vpop.permute.xlu1 %1303 }
 0x124   : > { %v1288_v17 = vpop.permute.xlu0 %1287  ;;  %v2076_v27 = vsel %vm2050_vm6, %v2043_v33, %v1304_v48 }
 0x125   : > { %v2060_v11 = vsel %vm2050_vm6, %v2027_v24, %v1288_v17 }
 0x127   : > { %v1306_v10 = vpop.permute.xlu1 %1305 }
 0x128   : > { %v1290_v25 = vpop.permute.xlu0 %1289  ;;  %v2078_v38 = vsel %vm2050_vm6, %v2045_v22, %v1306_v10 }
 0x129   : > { %v2062_v62 = vsel %vm2050_vm6, %v2029_v8, %v1290_v25 }
 0x12b   : > { %v1432_v7 = vpop.permute.xlu1 %1431 }
 0x12c   : > { %v1416_v18 = vpop.permute.xlu0 %1415  ;;  %v2109_v53 = vsel %vm2083_vm7, %v2076_v27, %v1432_v7 }
 0x12d   : > { %v2093_v40 = vsel %vm2083_vm7, %v2060_v11, %v1416_v18 }
 0x12f   : > { %v1434_v6 = vpop.permute.xlu1 %1433 }
 0x130   : > { %v1418_v61 = vpop.permute.xlu0 %1417  ;;  %v2111_v49 = vsel %vm2083_vm7, %v2078_v38, %v1434_v6 }
 0x131   : > { %v2095_v58 = vsel %vm2083_vm7, %v2062_v62, %v1418_v61 }
 0x133   : > { %v1544_v5 = vpop.permute.xlu1 %1543 }
 0x134   : > { %v1528_v13 = vpop.permute.xlu0 %1527  ;;  %v2142_v51 = vsel %vm2116_vm8, %v2109_v53, %v1544_v5 }
 0x135   : > { %v2126_v21 = vsel %vm2116_vm8, %v2093_v40, %v1528_v13 }
 0x137   : > { %v1546_v4 = vpop.permute.xlu1 %1545 }
 0x138   : > { %v1530_v37 = vpop.permute.xlu0 %1529  ;;  %v2144_v63 = vsel %vm2116_vm8, %v2111_v49, %v1546_v4 }
 0x139   : > { %v2128_v16 = vsel %vm2116_vm8, %v2095_v58, %v1530_v37 }
 0x13b   : > { %v1816_v28 = vpop.permute.xlu1 %1815 }
 0x13c   : > { %v1800_v3 = vpop.permute.xlu0 %1799  ;;  %v2175_v20 = vsel %vm2149_vm9, %v2142_v51, %v1816_v28 }
 0x13d   : > { %v2159_v52 = vsel %vm2149_vm9, %v2126_v21, %v1800_v3 }
 0x13f   : > { %v1818_v60 = vpop.permute.xlu1 %1817 }
 0x140   : > { %v1802_v54 = vpop.permute.xlu0 %1801  ;;  %v2177_v14 = vsel %vm2149_vm9, %v2144_v63, %v1818_v60 }
 0x141   : > { %v2161_v2 = vsel %vm2149_vm9, %v2128_v16, %v1802_v54 }
 0x143   : > { %v1944_v36 = vpop.permute.xlu1 %1943 }
 0x144   : > { %v2208_v45 = vsel %vm2182_vm10, %v2175_v20, %v1944_v36  ;;  %v1928_v26 = vpop.permute.xlu0 %1927 }
 0x145   : > { %v2192_v35 = vsel %vm2182_vm10, %v2159_v52, %v1928_v26  ;;  %2957 = vmatprep.mubr.msk.bf16.mxu1 %vm2242_vm11, %v2208_v45 }
 0x146   : > { %2941 = vmatprep.mubr.msk.bf16.mxu0 %vm2242_vm11, %v2192_v35 }
 0x147   : > { %v795_v56 = vpop.permute.xlu1 %794 }
 0x148   : > { %v779_v1 = vpop.permute.xlu0 %778  ;;  %v1981_v24 = vsel %vm1951_vm3, %v3948_v46, %v795_v56 }
 0x149   : > { %v1965_v27 = vsel %vm1951_vm3, %v3957_v15, %v779_v1 }
 0x14b   : > { %v1946_v43 = vpop.permute.xlu1 %1945 }
 0x14c   : > { %v2210_v55 = vsel %vm2182_vm10, %v2177_v14, %v1946_v43  ;;  %v1930_v19 = vpop.permute.xlu0 %1929 }
 0x14d   : > { %v2194_v23 = vsel %vm2182_vm10, %v2161_v2, %v1930_v19  ;;  %2958 = vmatmul.mubr.msk.bf16.gmra.mrb[8].mxu1 %vm2242_vm11, %v2210_v55  ;;  %v4442_v19 = vld [vmem:[%s4556_s2] ss:$0 sm:$0xff] }
 0x14e   : > { %2942 = vmatmul.mubr.msk.bf16.gmra.mrb[8].mxu0 %vm2242_vm11, %v2194_v23 }
 0x14f   : > { %v797_v31 = vpop.permute.xlu1 %796 }
 0x150   : > { %v781_v41 = vpop.permute.xlu0 %780  ;;  %v1983_v36 = vsel %vm1951_vm3, %v4023_v50, %v797_v31 }
 0x151   : > { %v1967_v15 = vsel %vm1951_vm3, %v4030_v34, %v781_v41 }
 0x153   : > { %v924_v48 = vpop.permute.xlu1 %923 }
 0x154   : > { %v908_v17 = vpop.permute.xlu0 %907  ;;  %v2014_v54 = vsel %vm1984_vm4, %v1981_v24, %v924_v48 }
 0x155   : > { %v1998_v11 = vsel %vm1984_vm4, %v1965_v27, %v908_v17 }
 0x157   : > { %v926_v10 = vpop.permute.xlu1 %925 }
 0x158   : > { %v910_v25 = vpop.permute.xlu0 %909  ;;  %v2016_v45 = vsel %vm1984_vm4, %v1983_v36, %v926_v10 }
 0x159   : > { %v2000_v39 = vsel %vm1984_vm4, %v1967_v15, %v910_v25 }
 0x15b   : > { %v1036_v7 = vpop.permute.xlu1 %1035 }
 0x15c   : > { %v1020_v18 = vpop.permute.xlu0 %1019  ;;  %v2047_v53 = vsel %vm2017_vm5, %v2014_v54, %v1036_v7 }
 0x15d   : > { %v2031_v51 = vsel %vm2017_vm5, %v1998_v11, %v1020_v18 }
 0x15f   : > { %v1038_v6 = vpop.permute.xlu1 %1037 }
 0x160   : > { %v1022_v61 = vpop.permute.xlu0 %1021  ;;  %v2049_v35 = vsel %vm2017_vm5, %v2016_v45, %v1038_v6 }
 0x161   : > { %v2033_v59 = vsel %vm2017_vm5, %v2000_v39, %v1022_v61 }
 0x163   : > { %v1308_v5 = vpop.permute.xlu1 %1307 }
 0x164   : > { %v1292_v13 = vpop.permute.xlu0 %1291  ;;  %v2080_v21 = vsel %vm2050_vm6, %v2047_v53, %v1308_v5 }
 0x165   : > { %v2064_v46 = vsel %vm2050_vm6, %v2031_v51, %v1292_v13 }
 0x167   : > { %v1310_v4 = vpop.permute.xlu1 %1309 }
 0x168   : > { %v1294_v37 = vpop.permute.xlu0 %1293  ;;  %v2082_v30 = vsel %vm2050_vm6, %v2049_v35, %v1310_v4 }
 0x169   : > { %v2066_v8 = vsel %vm2050_vm6, %v2033_v59, %v1294_v37 }
 0x16b   : > { %v1436_v28 = vpop.permute.xlu1 %1435 }
 0x16c   : > { %v1420_v3 = vpop.permute.xlu0 %1419  ;;  %v2113_v52 = vsel %vm2083_vm7, %v2080_v21, %v1436_v28 }
 0x16d   : > { %v2097_v26 = vsel %vm2083_vm7, %v2064_v46, %v1420_v3 }
 0x16f   : > { %v1438_v29 = vpop.permute.xlu1 %1437 }
 0x170   : > { %v1422_v32 = vpop.permute.xlu0 %1421  ;;  %v2115_v38 = vsel %vm2083_vm7, %v2082_v30, %v1438_v29 }
 0x171   : > { %v2099_v62 = vsel %vm2083_vm7, %v2066_v8, %v1422_v32 }
 0x173   : > { %v1548_v44 = vpop.permute.xlu1 %1547 }
 0x174   : > { %v1532_v47 = vpop.permute.xlu0 %1531  ;;  %v2146_v9 = vsel %vm2116_vm8, %v2113_v52, %v1548_v44 }
 0x175   : > { %v2130_v42 = vsel %vm2116_vm8, %v2097_v26, %v1532_v47 }
 0x177   : > { %v1550_v0 = vpop.permute.xlu1 %1549 }
 0x178   : > { %v1534_v57 = vpop.permute.xlu0 %1533  ;;  %v2148_v49 = vsel %vm2116_vm8, %v2115_v38, %v1550_v0 }
 0x179   : > { %v2132_v58 = vsel %vm2116_vm8, %v2099_v62, %v1534_v57 }
 0x17b   : > { %v1820_v33 = vpop.permute.xlu1 %1819 }
 0x17c   : > { %v1804_v60 = vpop.permute.xlu0 %1803  ;;  %v2179_v50 = vsel %vm2149_vm9, %v2146_v9, %v1820_v33 }
 0x17d   : > { %v2163_v34 = vsel %vm2149_vm9, %v2130_v42, %v1804_v60 }
 0x17f   : > { %v1822_v40 = vpop.permute.xlu1 %1821 }
 0x180   : > { %v1806_v20 = vpop.permute.xlu0 %1805  ;;  %v2181_v63 = vsel %vm2149_vm9, %v2148_v49, %v1822_v40 }
 0x181   : > { %v2165_v14 = vsel %vm2149_vm9, %v2132_v58, %v1806_v20 }
 0x183   : > { %v1948_v12 = vpop.permute.xlu1 %1947 }
 0x184   : > { %v2212_v22 = vsel %vm2182_vm10, %v2179_v50, %v1948_v12  ;;  %v1932_v56 = vpop.permute.xlu0 %1931 }
 0x185   : > { %v2196_v1 = vsel %vm2182_vm10, %v2163_v34, %v1932_v56  ;;  %2961 = vmatprep.mubr.msk.bf16.mxu1 %vm2242_vm11, %v2212_v22 }
 0x186   : > { %2945 = vmatprep.mubr.msk.bf16.mxu0 %vm2242_vm11, %v2196_v1 }
 0x187   : > { %v1950_v16 = vpop.permute.xlu1 %1949 }
 0x188   : > { %v2214_v43 = vsel %vm2182_vm10, %v2181_v63, %v1950_v16  ;;  %v1934_v2 = vpop.permute.xlu0 %1933 }
 0x189   : > { %v2198_v55 = vsel %vm2182_vm10, %v2165_v14, %v1934_v2  ;;  %2962 = vmatmul.mubr.msk.bf16.gmra.mrb[12].mxu1 %vm2242_vm11, %v2214_v43 }
 0x18a   : > { %2946 = vmatmul.mubr.msk.bf16.gmra.mrb[12].mxu0 %vm2242_vm11, %v2198_v55 }
 0x1a0   : > { %v2951_v23 = vpop.f32.mrb[0].mxu1 }
 0x1a1   : > { %v2935_v31 = vpop.f32.mrb[0].mxu0  ;;  %v2386_v41 = vadd.f32 %v2951_v23, %v4442_v19  ;;  %v2377_v48 = vpop.f32.mrb[1].mxu1 }
 0x1a2   : > { %v2322_v17 = vadd.f32 %v2935_v31, %v4442_v19  ;;  %v2313_v10 = vpop.f32.mrb[1].mxu0  ;;  %v2378_v25 = vadd.f32 %v4442_v19, %v2377_v48  ;;  %v2952_v7 = vpop.f32.mrb[2].mxu1 }
 0x1a3   : > { %2458 = vst.msk [vmem:[%s4447_s16 + $0x90] sm:$0xff] %vm1984_vm4, %v2386_v41  ;;  %v2314_v18 = vadd.f32 %v4442_v19, %v2313_v10  ;;  %v2936_v6 = vpop.f32.mrb[2].mxu0  ;;  %v2389_v61 = vadd.f32 %v2952_v7, %v4442_v19  ;;  %v2380_v5 = vpop.f32.mrb[3].mxu1 }
 0x1a4   : > { %2442 = vst.msk [vmem:[%s4447_s16 + $0x10] sm:$0xff] %vm1984_vm4, %v2322_v17  ;;  %2456 = vst.msk [vmem:[%s4447_s16 + $0x80] sm:$0xff] %vm1984_vm4, %v2378_v25  ;;  %v2325_v13 = vadd.f32 %v2936_v6, %v4442_v19  ;;  %v2316_v4 = vpop.f32.mrb[3].mxu0  ;;  %v2381_v37 = vadd.f32 %v4442_v19, %v2380_v5 }
 0x1a5   : > { %2440 = vst.msk [vmem:[%s4447_s16] sm:$0xff] %vm1984_vm4, %v2314_v18  ;;  %2459 = vst.msk [vmem:[%s4447_s16 + $0x98] sm:$0xff] %vm1984_vm4, %v2389_v61  ;;  %v2317_v28 = vadd.f32 %v4442_v19, %v2316_v4 }
 0x1a6   : > { %2443 = vst.msk [vmem:[%s4447_s16 + $0x18] sm:$0xff] %vm1984_vm4, %v2325_v13  ;;  %2457 = vst.msk [vmem:[%s4447_s16 + $0x88] sm:$0xff] %vm1984_vm4, %v2381_v37 }
 0x1a7   : > { %2441 = vst.msk [vmem:[%s4447_s16 + $0x8] sm:$0xff] %vm1984_vm4, %v2317_v28 }
 0x1e0   : > { %v2955_v3 = vpop.f32.mrb[4].mxu1 }
 0x1e1   : > { %v2939_v29 = vpop.f32.mrb[4].mxu0  ;;  %v2402_v32 = vadd.f32 %v2955_v3, %v4442_v19  ;;  %v2393_v44 = vpop.f32.mrb[5].mxu1 }
 0x1e2   : > { %v2338_v47 = vadd.f32 %v2939_v29, %v4442_v19  ;;  %v2329_v0 = vpop.f32.mrb[5].mxu0  ;;  %v2394_v57 = vadd.f32 %v4442_v19, %v2393_v44  ;;  %v2956_v33 = vpop.f32.mrb[6].mxu1 }
 0x1e3   : > { %2462 = vst.msk [vmem:[%s4447_s16 + $0xb0] sm:$0xff] %vm1984_vm4, %v2402_v32  ;;  %v2330_v60 = vadd.f32 %v4442_v19, %v2329_v0  ;;  %v2940_v24 = vpop.f32.mrb[6].mxu0  ;;  %v2405_v27 = vadd.f32 %v2956_v33, %v4442_v19  ;;  %v2396_v54 = vpop.f32.mrb[7].mxu1 }
 0x1e4   : > { %2446 = vst.msk [vmem:[%s4447_s16 + $0x30] sm:$0xff] %vm1984_vm4, %v2338_v47  ;;  %2460 = vst.msk [vmem:[%s4447_s16 + $0xa0] sm:$0xff] %vm1984_vm4, %v2394_v57  ;;  %v2341_v11 = vadd.f32 %v2940_v24, %v4442_v19  ;;  %v2332_v53 = vpop.f32.mrb[7].mxu0  ;;  %v2397_v40 = vadd.f32 %v4442_v19, %v2396_v54 }
 0x1e5   : > { %2444 = vst.msk [vmem:[%s4447_s16 + $0x20] sm:$0xff] %vm1984_vm4, %v2330_v60  ;;  %2463 = vst.msk [vmem:[%s4447_s16 + $0xb8] sm:$0xff] %vm1984_vm4, %v2405_v27  ;;  %v2333_v51 = vadd.f32 %v4442_v19, %v2332_v53 }
 0x1e6   : > { %2447 = vst.msk [vmem:[%s4447_s16 + $0x38] sm:$0xff] %vm1984_vm4, %v2341_v11  ;;  %2461 = vst.msk [vmem:[%s4447_s16 + $0xa8] sm:$0xff] %vm1984_vm4, %v2397_v40 }
 0x1e7   : > { %2445 = vst.msk [vmem:[%s4447_s16 + $0x28] sm:$0xff] %vm1984_vm4, %v2333_v51 }
 0x220   : > { %v2959_v21 = vpop.f32.mrb[8].mxu1 }
 0x221   : > { %v2943_v20 = vpop.f32.mrb[8].mxu0  ;;  %v2418_v36 = vadd.f32 %v2959_v21, %v4442_v19  ;;  %v2409_v46 = vpop.f32.mrb[9].mxu1 }
 0x222   : > { %v2354_v52 = vadd.f32 %v2943_v20, %v4442_v19  ;;  %v2345_v15 = vpop.f32.mrb[9].mxu0  ;;  %v2410_v45 = vadd.f32 %v4442_v19, %v2409_v46  ;;  %v2960_v26 = vpop.f32.mrb[10].mxu1 }
 0x223   : > { %2466 = vst.msk [vmem:[%s4447_s16 + $0xd0] sm:$0xff] %vm1984_vm4, %v2418_v36  ;;  %v2346_v9 = vadd.f32 %v4442_v19, %v2345_v15  ;;  %v2944_v39 = vpop.f32.mrb[10].mxu0  ;;  %v2421_v35 = vadd.f32 %v2960_v26, %v4442_v19  ;;  %v2412_v42 = vpop.f32.mrb[11].mxu1 }
 0x224   : > { %2450 = vst.msk [vmem:[%s4447_s16 + $0x50] sm:$0xff] %vm1984_vm4, %v2354_v52  ;;  %2464 = vst.msk [vmem:[%s4447_s16 + $0xc0] sm:$0xff] %vm1984_vm4, %v2410_v45  ;;  %v2357_v50 = vadd.f32 %v2944_v39, %v4442_v19  ;;  %v2348_v12 = vpop.f32.mrb[11].mxu0  ;;  %v2413_v59 = vadd.f32 %v4442_v19, %v2412_v42 }
 0x225   : > { %2448 = vst.msk [vmem:[%s4447_s16 + $0x40] sm:$0xff] %vm1984_vm4, %v2346_v9  ;;  %2467 = vst.msk [vmem:[%s4447_s16 + $0xd8] sm:$0xff] %vm1984_vm4, %v2421_v35  ;;  %v2349_v30 = vadd.f32 %v4442_v19, %v2348_v12 }
 0x226   : > { %2451 = vst.msk [vmem:[%s4447_s16 + $0x58] sm:$0xff] %vm1984_vm4, %v2357_v50  ;;  %2465 = vst.msk [vmem:[%s4447_s16 + $0xc8] sm:$0xff] %vm1984_vm4, %v2413_v59 }
 0x227   : > { %2449 = vst.msk [vmem:[%s4447_s16 + $0x48] sm:$0xff] %vm1984_vm4, %v2349_v30 }
 0x25c   : > { %v2963_v34 = vpop.f32.mrb[12].mxu1 }
 0x25d   : > { %v2947_v22 = vpop.f32.mrb[12].mxu0  ;;  %v2434_v56 = vadd.f32 %v2963_v34, %v4442_v19  ;;  %v2425_v8 = vpop.f32.mrb[13].mxu1 }
 0x25e   : > { %v2370_v38 = vadd.f32 %v2947_v22, %v4442_v19  ;;  %v2361_v1 = vpop.f32.mrb[13].mxu0  ;;  %v2426_v62 = vadd.f32 %v4442_v19, %v2425_v8  ;;  %v2964_v49 = vpop.f32.mrb[14].mxu1 }
 0x25f   : > { %2470 = vst.msk [vmem:[%s4447_s16 + $0xf0] sm:$0xff] %vm1984_vm4, %v2434_v56  ;;  %v2362_v58 = vadd.f32 %v4442_v19, %v2361_v1  ;;  %v2948_v63 = vpop.f32.mrb[14].mxu0  ;;  %v2437_v16 = vadd.f32 %v2964_v49, %v4442_v19  ;;  %v2428_v14 = vpop.f32.mrb[15].mxu1 }
 0x260   : > { %2454 = vst.msk [vmem:[%s4447_s16 + $0x70] sm:$0xff] %vm1984_vm4, %v2370_v38  ;;  %2468 = vst.msk [vmem:[%s4447_s16 + $0xe0] sm:$0xff] %vm1984_vm4, %v2426_v62  ;;  %v2373_v43 = vadd.f32 %v2948_v63, %v4442_v19  ;;  %v2364_v2 = vpop.f32.mrb[15].mxu0  ;;  %v2429_v55 = vadd.f32 %v4442_v19, %v2428_v14 }
 0x261   : > { %2452 = vst.msk [vmem:[%s4447_s16 + $0x60] sm:$0xff] %vm1984_vm4, %v2362_v58  ;;  %2471 = vst.msk [vmem:[%s4447_s16 + $0xf8] sm:$0xff] %vm1984_vm4, %v2437_v16  ;;  %v2365_v23 = vadd.f32 %v4442_v19, %v2364_v2 }
 0x262   : > { %2455 = vst.msk [vmem:[%s4447_s16 + $0x78] sm:$0xff] %vm1984_vm4, %v2373_v43  ;;  %2469 = vst.msk [vmem:[%s4447_s16 + $0xe8] sm:$0xff] %vm1984_vm4, %v2429_v55 }
 0x263   : > { %2453 = vst.msk [vmem:[%s4447_s16 + $0x68] sm:$0xff] %vm1984_vm4, %v2365_v23 }
 0x264 PF: > { %s13_s14 = sadd.s32 1, %s3175_s14   ;;  %s4570_s12 = smov %s3171_s13 }
 0x265   : > { %p10_p5 = scmp.ge.s32.totalorder %s13_s14, 4   ;;  %s4571_s13 = smov %s4573_s15 }
 0x267   :  { %12 = sbr.rel (!%p10_p5) target bundleno = 2 (0x2), region = 71 }

</bundles_post_ra>
